<compile_context>
chip_gen: v7x
topology: tpu7x:2x2x1
jax: 0.10.0
libtpu: 0.0.40
codegen_flags: <defaults>
</compile_context>

<pallas_src>
import functools

import jax
import jax.numpy as jnp
import numpy as np
from jax.experimental import pallas as pl
from jax.experimental.pallas import tpu as pltpu


# ----------------------------------------------------------------------------
# Pallas kernel: one invocation per batch block, recurrence unrolled in-kernel.
# ----------------------------------------------------------------------------
def moglstm_kernel(x_ref, q_ref, r_ref, wmx_ref, wmh_ref, wih_ref, whm_ref,
                   bm_ref, bg_ref, out_ref,
                   *, seq_len, hidden_size, mog_iterations, compute_dtype,
                   store_group):
    B = x_ref.shape[1]          # x block is (L, B_blk, C)
    H = hidden_size
    cd = compute_dtype

    # init_states is None in the reference module -> zero initial state.
    ht = jnp.zeros((B, H), jnp.float32)
    ct = jnp.zeros((B, H), jnp.float32)

    # Load weights once (hoisted out of the time loop).
    q = q_ref[...]        # (H, C)   -> ht @ q : (B, C)
    r = r_ref[...]        # (C, H)   -> xt @ r : (B, H)
    wmx = wmx_ref[...]    # (C, H)
    wmh = wmh_ref[...]    # (H, H)
    wih = wih_ref[...]    # (C, 4H)
    whm = whm_ref[...]    # (H, 4H)

    # Hoisted bias broadcasts (JAX does not CSE broadcast_in_dim).
    bm_b = jnp.broadcast_to(bm_ref[...], (B, H))        # f32
    bg_b = jnp.broadcast_to(bg_ref[...], (B, 4 * H))    # f32

    pending = []                                        # <= store_group live ht's
    for t in range(seq_len):                            # static unroll over time
        xt = x_ref[t].astype(jnp.float32)               # contiguous (B, C) read

        if t == 0:
            # Zero initial state: 2*sigmoid(ht@Q) == 1 exactly and
            # 2*sigmoid(xt@R)*ht == 0 exactly, so every mogrifier iteration is
            # an identity and ht @ Wmh == 0.  Skip that serial work entirely.
            mt = jnp.dot(xt.astype(cd), wmx,
                         preferred_element_type=jnp.float32) + bm_b
        else:
            # ---- mogrify (static unroll; elementwise math in f32) ----
            for i in range(1, mog_iterations + 1):
                if i % 2 == 0:
                    gate = jax.nn.sigmoid(
                        jnp.dot(xt.astype(cd), r,
                                preferred_element_type=jnp.float32))
                    ht = 2.0 * gate * ht
                else:
                    gate = jax.nn.sigmoid(
                        jnp.dot(ht.astype(cd), q,
                                preferred_element_type=jnp.float32))
                    xt = 2.0 * gate * xt

            # ---- mt = Wmx(xt) + Wmh(ht), un-fused (no lane concat on the
            #      dependent chain; ht@wmh is independent of xt's path) ----
            mt = (jnp.dot(xt.astype(cd), wmx, preferred_element_type=jnp.float32)
                  + jnp.dot(ht.astype(cd), wmh, preferred_element_type=jnp.float32)
                  + bm_b)

        # ---- gates = Wih(xt) + Whm(mt); xt@wih is independent of mt ----
        gates = (jnp.dot(xt.astype(cd), wih, preferred_element_type=jnp.float32)
                 + jnp.dot(mt.astype(cd), whm, preferred_element_type=jnp.float32)
                 + bg_b)

        # Full-tile sigmoid (one EUP pass), tanh only on the candidate slice.
        sig = jax.nn.sigmoid(gates)
        it = sig[:, 0 * H:1 * H]
        ft = sig[:, 1 * H:2 * H]
        ot = sig[:, 3 * H:4 * H]
        cg = jnp.tanh(gates[:, 2 * H:3 * H])

        ct = ft * ct + it * cg
        ht = ot * jnp.tanh(ct)

        # Grouped lane-dense stores (store_group*H == 128 lanes when possible),
        # off the recurrence-dependent chain; avoids keeping L ht's live.
        pending.append(ht)
        if len(pending) == store_group or t == seq_len - 1:
            g0 = t + 1 - len(pending)
            block = pending[0] if len(pending) == 1 else jnp.concatenate(
                pending, axis=1)
            out_ref[:, g0 * H:(t + 1) * H] = block
            pending = []


# ----------------------------------------------------------------------------
# Wrapper
# ----------------------------------------------------------------------------
def moglstm_forward(x, params, *, hidden_size, mog_iterations,
                    matmul_dtype=jnp.bfloat16, batch_block=None):
    """x: (B, L, C) float32.  Returns hidden_seq: (B, L, H) float32."""
    B, L, C = x.shape
    H = hidden_size
    (q, r, wmx_t, bmx, wmh_t, bmh, wih_t, bih, whm_t, bhm) = params

    # Pre-summed biases (one f32 add per projection pair inside the kernel).
    bm = (bmx + bmh).astype(jnp.float32)                  # (1, H)
    bg = (bih + bhm).astype(jnp.float32)                  # (1, 4H)

    cd = matmul_dtype
    q_c = q.astype(cd)
    r_c = r.astype(cd)
    wmx_c = wmx_t.astype(cd)
    wmh_c = wmh_t.astype(cd)
    wih_c = wih_t.astype(cd)
    whm_c = whm_t.astype(cd)

    # (L, B, C): each timestep reads a contiguous (B, C) block.
    x_lbc = jnp.transpose(x, (1, 0, 2))

    # Batch grid axis: split B into blocks (multiples of 8 sublanes) so v7x's
    # two TensorCores each run an independent slice; one block if B is small.
    if batch_block is None:
        half = B // 2
        batch_block = half if (B >= 16 and half % 8 == 0) else B
    assert B % batch_block == 0
    assert batch_block % 8 == 0 or batch_block == B
    nb = B // batch_block

    # Unmasked output stores: group steps so group*H is a 128-lane multiple.
    if H < 128 and 128 % H == 0:
        store_group = 128 // H
    else:
        store_group = 1

    kernel = functools.partial(
        moglstm_kernel, seq_len=L, hidden_size=H,
        mog_iterations=mog_iterations, compute_dtype=cd,
        store_group=store_group)

    def full2d_spec(arr):
        return pl.BlockSpec(arr.shape, lambda b: (0, 0))

    grid_spec = pltpu.PrefetchScalarGridSpec(
        num_scalar_prefetch=0,
        grid=(nb,),
        in_specs=[
            pl.BlockSpec((L, batch_block, C), lambda b: (0, b, 0)),   # x
            full2d_spec(q_c), full2d_spec(r_c),
            full2d_spec(wmx_c), full2d_spec(wmh_c),
            full2d_spec(wih_c), full2d_spec(whm_c),
            full2d_spec(bm), full2d_spec(bg),
        ],
        out_specs=pl.BlockSpec((batch_block, L * H), lambda b: (b, 0)),
    )

    # VMEM budget: double-buffered per-block x/out slabs + weights, with
    # headroom; capped at v7x's 64 MiB physical VMEM.
    f32b = 4
    wb = jnp.dtype(cd).itemsize
    x_block_bytes = L * batch_block * C * f32b
    out_block_bytes = batch_block * L * H * f32b
    weight_bytes = (H * C + C * H + C * H + H * H + C * 4 * H + H * 4 * H) * wb \
        + (H + 4 * H) * f32b
    footprint = 2 * (x_block_bytes + weight_bytes) + 2 * out_block_bytes
    vmem_limit = int(min(64 * 2 ** 20, max(32 * 2 ** 20, 4 * footprint)))

    out_flat = pl.pallas_call(
        kernel,
        out_shape=jax.ShapeDtypeStruct((B, L * H), jnp.float32),
        grid_spec=grid_spec,
        compiler_params=pltpu.CompilerParams(
            dimension_semantics=("parallel",),
            vmem_limit_bytes=vmem_limit),
    )(x_lbc, q_c, r_c, wmx_c, wmh_c, wih_c, whm_c, bm, bg)

    return out_flat.reshape(B, L, H)          # free reshape, no transpose


# ----------------------------------------------------------------------------
# Pure-JAX reference (mirrors the PyTorch forward exactly)
# ----------------------------------------------------------------------------
def moglstm_reference(x, params, *, hidden_size, mog_iterations):
    (q, r, wmx_t, bmx, wmh_t, bmh, wih_t, bih, whm_t, bhm) = params
    B, L, C = x.shape
    H = hidden_size
    ht = jnp.zeros((B, H), jnp.float32)
    ct = jnp.zeros((B, H), jnp.float32)
    outs = []
    with jax.default_matmul_precision("highest"):
        for t in range(L):
            xt = x[:, t, :]
            for i in range(1, mog_iterations + 1):
                if i % 2 == 0:
                    ht = 2.0 * jax.nn.sigmoid(xt @ r) * ht
                else:
                    xt = 2.0 * jax.nn.sigmoid(ht @ q) * xt
            mt = xt @ wmx_t + bmx + ht @ wmh_t + bmh
            gates = xt @ wih_t + bih + mt @ whm_t + bhm
            ig, fg, cg, og = jnp.split(gates, 4, axis=1)
            ct = jax.nn.sigmoid(fg) * ct + jax.nn.sigmoid(ig) * jnp.tanh(cg)
            ht = jax.nn.sigmoid(og) * jnp.tanh(ct)
            outs.append(ht)
    return jnp.stack(outs, axis=1)  # (B, L, H)


# ----------------------------------------------------------------------------
# Deterministic parameter init (xavier_uniform for >=2D, zeros for biases)
# ----------------------------------------------------------------------------
def xavier_uniform(key, shape):
    fan_out, fan_in = shape  # PyTorch convention for 2-D params: (out, in)
    bound = np.sqrt(6.0 / (fan_in + fan_out))
    return jax.random.uniform(key, shape, jnp.float32, -bound, bound)


def make_params(key, C, H):
    ks = jax.random.split(key, 6)
    wih = xavier_uniform(ks[0], (4 * H, C))   # nn.Linear(C, 4H).weight
    wmx = xavier_uniform(ks[1], (H, C))       # nn.Linear(C, H).weight
    wmh = xavier_uniform(ks[2], (H, H))       # nn.Linear(H, H).weight
    whm = xavier_uniform(ks[3], (4 * H, H))   # nn.Linear(H, 4H).weight
    q = xavier_uniform(ks[4], (H, C))         # Parameter Q
    r = xavier_uniform(ks[5], (C, H))         # Parameter R
    # All 1-D params (biases) are zero-initialized in the module.
    bih = jnp.zeros((1, 4 * H), jnp.float32)
    bmx = jnp.zeros((1, H), jnp.float32)
    bmh = jnp.zeros((1, H), jnp.float32)
    bhm = jnp.zeros((1, 4 * H), jnp.float32)
    # Pass transposed Linear weights so kernels compute x @ W^T as x @ Wt.
    return (q, r,
            wmx.T, bmx,
            wmh.T, bmh,
            wih.T, bih,
            whm.T, bhm)


if __name__ == "__main__":
    # configs: L=8 (seq), C=16 (feature / input_size), hidden_sz=32,
    # mog_iterations=5, dilation unused in forward.
    B, L, C, H = 8, 8, 16, 32
    MOG_ITERS = 5

    key = jax.random.PRNGKey(0)
    kx, kp, kx2 = jax.random.split(key, 3)
    x = jax.random.normal(kx, (B, L, C), jnp.float32)
    params = make_params(kp, C, H)

    ref = moglstm_reference(x, params, hidden_size=H, mog_iterations=MOG_ITERS)

    # f32-MXU-operand path: tight tolerance vs. the highest-precision reference.
    out_f32 = jax.block_until_ready(
        moglstm_forward(x, params, hidden_size=H, mog_iterations=MOG_ITERS,
                        matmul_dtype=jnp.float32))
    np.testing.assert_allclose(np.asarray(out_f32), np.asarray(ref),
                               rtol=2e-3, atol=2e-3)

    # Default bf16-MXU-operand path (all generations); elementwise state math
    # and accumulation stay f32.  Tolerance validated at L=8.
    out_bf16 = jax.block_until_ready(
        moglstm_forward(x, params, hidden_size=H, mog_iterations=MOG_ITERS))
    np.testing.assert_allclose(np.asarray(out_bf16), np.asarray(ref),
                               rtol=5e-2, atol=5e-2)

    # Larger batch exercising the "parallel" batch-grid split (2 blocks of 32;
    # both TensorCores on v7x, wider matmul M everywhere).
    B2 = 64
    x2 = jax.random.normal(kx2, (B2, L, C), jnp.float32)
    ref2 = moglstm_reference(x2, params, hidden_size=H,
                             mog_iterations=MOG_ITERS)
    out2 = jax.block_until_ready(
        moglstm_forward(x2, params, hidden_size=H, mog_iterations=MOG_ITERS,
                        matmul_dtype=jnp.float32))
    np.testing.assert_allclose(np.asarray(out2), np.asarray(ref2),
                               rtol=2e-3, atol=2e-3)

    print("KERNEL_OK")
</pallas_src>

<mosaic_0001>
module attributes {stable_mosaic.version = 11 : i64} {
  func.func @moglstm_kernel(%arg0: i32, %arg1: memref<8x8x16xf32, #tpu.memory_space<vmem>>, %arg2: memref<32x16xf32, #tpu.memory_space<vmem>>, %arg3: memref<16x32xf32, #tpu.memory_space<vmem>>, %arg4: memref<16x32xf32, #tpu.memory_space<vmem>>, %arg5: memref<32x32xf32, #tpu.memory_space<vmem>>, %arg6: memref<16x128xf32, #tpu.memory_space<vmem>>, %arg7: memref<32x128xf32, #tpu.memory_space<vmem>>, %arg8: memref<1x32xf32, #tpu.memory_space<vmem>>, %arg9: memref<1x128xf32, #tpu.memory_space<vmem>>, %arg10: memref<8x256xf32, #tpu.memory_space<vmem>>) attributes {dimension_semantics = [#tpu.dimension_semantics<parallel>], iteration_bounds = array<i64: 1>, scalar_prefetch = 0 : i64, scratch_operands = 0 : i64, tpu.core_type = #tpu.core_type<tc>, window_params = [{transform_indices = @transform_0, window_bounds = array<i64: 8, 8, 16>}, {pipeline_mode = #tpu.pipeline_mode<synchronous>, transform_indices = @transform_1, window_bounds = array<i64: 32, 16>}, {pipeline_mode = #tpu.pipeline_mode<synchronous>, transform_indices = @transform_2, window_bounds = array<i64: 16, 32>}, {pipeline_mode = #tpu.pipeline_mode<synchronous>, transform_indices = @transform_3, window_bounds = array<i64: 16, 32>}, {pipeline_mode = #tpu.pipeline_mode<synchronous>, transform_indices = @transform_4, window_bounds = array<i64: 32, 32>}, {pipeline_mode = #tpu.pipeline_mode<synchronous>, transform_indices = @transform_5, window_bounds = array<i64: 16, 128>}, {pipeline_mode = #tpu.pipeline_mode<synchronous>, transform_indices = @transform_6, window_bounds = array<i64: 32, 128>}, {pipeline_mode = #tpu.pipeline_mode<synchronous>, transform_indices = @transform_7, window_bounds = array<i64: 1, 32>}, {pipeline_mode = #tpu.pipeline_mode<synchronous>, transform_indices = @transform_8, window_bounds = array<i64: 1, 128>}, {transform_indices = @transform_9, window_bounds = array<i64: 8, 256>}]} {
    %cst = arith.constant 0.000000e+00 : f32
    %0 = vector.broadcast %cst : f32 to vector<8x32xf32>
    %c0 = arith.constant 0 : index
    %c0_0 = arith.constant 0 : index
    %1 = vector.load %arg2[%c0, %c0_0] : memref<32x16xf32, #tpu.memory_space<vmem>>, vector<32x16xf32>
    %c0_1 = arith.constant 0 : index
    %c0_2 = arith.constant 0 : index
    %2 = vector.load %arg3[%c0_1, %c0_2] : memref<16x32xf32, #tpu.memory_space<vmem>>, vector<16x32xf32>
    %c0_3 = arith.constant 0 : index
    %c0_4 = arith.constant 0 : index
    %3 = vector.load %arg4[%c0_3, %c0_4] : memref<16x32xf32, #tpu.memory_space<vmem>>, vector<16x32xf32>
    %c0_5 = arith.constant 0 : index
    %c0_6 = arith.constant 0 : index
    %4 = vector.load %arg5[%c0_5, %c0_6] : memref<32x32xf32, #tpu.memory_space<vmem>>, vector<32x32xf32>
    %c0_7 = arith.constant 0 : index
    %c0_8 = arith.constant 0 : index
    %5 = vector.load %arg6[%c0_7, %c0_8] : memref<16x128xf32, #tpu.memory_space<vmem>>, vector<16x128xf32>
    %c0_9 = arith.constant 0 : index
    %c0_10 = arith.constant 0 : index
    %6 = vector.load %arg7[%c0_9, %c0_10] : memref<32x128xf32, #tpu.memory_space<vmem>>, vector<32x128xf32>
    %c0_11 = arith.constant 0 : index
    %c0_12 = arith.constant 0 : index
    %7 = vector.load %arg8[%c0_11, %c0_12] : memref<1x32xf32, #tpu.memory_space<vmem>>, vector<1x32xf32>
    %8 = vector.shape_cast %7 : vector<1x32xf32> to vector<1x32xf32>
    %9 = vector.broadcast %8 : vector<1x32xf32> to vector<8x32xf32>
    %c0_13 = arith.constant 0 : index
    %c0_14 = arith.constant 0 : index
    %10 = vector.load %arg9[%c0_13, %c0_14] : memref<1x128xf32, #tpu.memory_space<vmem>>, vector<1x128xf32>
    %11 = vector.shape_cast %10 : vector<1x128xf32> to vector<1x128xf32>
    %12 = vector.broadcast %11 : vector<1x128xf32> to vector<8x128xf32>
    %c0_15 = arith.constant 0 : index
    %c0_16 = arith.constant 0 : index
    %c0_17 = arith.constant 0 : index
    %13 = vector.load %arg1[%c0_15, %c0_16, %c0_17] : memref<8x8x16xf32, #tpu.memory_space<vmem>>, vector<1x8x16xf32>
    %14 = vector.shape_cast %13 : vector<1x8x16xf32> to vector<8x16xf32>
    %cst_18 = arith.constant dense<0.000000e+00> : vector<8x32xf32>
    %15 = tpu.matmul %14, %3, %cst_18 {dimension_numbers = #tpu.dot_dimension_numbers<[1], [0], [0], [1], [0, 0, 1, 1], [], []>} : vector<8x16xf32>, vector<16x32xf32>, vector<8x32xf32> -> vector<8x32xf32>
    %16 = arith.addf %15, %9 : vector<8x32xf32>
    %cst_19 = arith.constant dense<0.000000e+00> : vector<8x128xf32>
    %17 = tpu.matmul %14, %5, %cst_19 {dimension_numbers = #tpu.dot_dimension_numbers<[1], [0], [0], [1], [0, 0, 1, 1], [], []>} : vector<8x16xf32>, vector<16x128xf32>, vector<8x128xf32> -> vector<8x128xf32>
    %cst_20 = arith.constant dense<0.000000e+00> : vector<8x128xf32>
    %18 = tpu.matmul %16, %6, %cst_20 {dimension_numbers = #tpu.dot_dimension_numbers<[1], [0], [0], [1], [0, 0, 1, 1], [], []>} : vector<8x32xf32>, vector<32x128xf32>, vector<8x128xf32> -> vector<8x128xf32>
    %19 = arith.addf %17, %18 : vector<8x128xf32>
    %20 = arith.addf %19, %12 : vector<8x128xf32>
    %21 = arith.negf %20 : vector<8x128xf32>
    %22 = math.exp %21 : vector<8x128xf32>
    %cst_21 = arith.constant 1.000000e+00 : f32
    %23 = vector.broadcast %cst_21 : f32 to vector<8x128xf32>
    %24 = arith.addf %23, %22 : vector<8x128xf32>
    %25 = arith.divf %23, %24 : vector<8x128xf32>
    %26 = vector.extract_strided_slice %25 {offsets = [0, 0], sizes = [8, 32], strides = [1, 1]} : vector<8x128xf32> to vector<8x32xf32>
    %27 = vector.extract_strided_slice %25 {offsets = [0, 32], sizes = [8, 32], strides = [1, 1]} : vector<8x128xf32> to vector<8x32xf32>
    %28 = vector.extract_strided_slice %25 {offsets = [0, 96], sizes = [8, 32], strides = [1, 1]} : vector<8x128xf32> to vector<8x32xf32>
    %29 = vector.extract_strided_slice %20 {offsets = [0, 64], sizes = [8, 32], strides = [1, 1]} : vector<8x128xf32> to vector<8x32xf32>
    %30 = math.tanh %29 : vector<8x32xf32>
    %31 = arith.mulf %27, %0 : vector<8x32xf32>
    %32 = arith.mulf %26, %30 : vector<8x32xf32>
    %33 = arith.addf %31, %32 : vector<8x32xf32>
    %34 = math.tanh %33 : vector<8x32xf32>
    %35 = arith.mulf %28, %34 : vector<8x32xf32>
    %c1 = arith.constant 1 : index
    %c0_22 = arith.constant 0 : index
    %c0_23 = arith.constant 0 : index
    %36 = vector.load %arg1[%c1, %c0_22, %c0_23] : memref<8x8x16xf32, #tpu.memory_space<vmem>>, vector<1x8x16xf32>
    %37 = vector.shape_cast %36 : vector<1x8x16xf32> to vector<8x16xf32>
    %cst_24 = arith.constant dense<0.000000e+00> : vector<8x16xf32>
    %38 = tpu.matmul %35, %1, %cst_24 {dimension_numbers = #tpu.dot_dimension_numbers<[1], [0], [0], [1], [0, 0, 1, 1], [], []>} : vector<8x32xf32>, vector<32x16xf32>, vector<8x16xf32> -> vector<8x16xf32>
    %39 = arith.negf %38 : vector<8x16xf32>
    %40 = math.exp %39 : vector<8x16xf32>
    %cst_25 = arith.constant 1.000000e+00 : f32
    %41 = vector.broadcast %cst_25 : f32 to vector<8x16xf32>
    %42 = arith.addf %41, %40 : vector<8x16xf32>
    %43 = arith.divf %41, %42 : vector<8x16xf32>
    %cst_26 = arith.constant 2.000000e+00 : f32
    %44 = vector.broadcast %cst_26 : f32 to vector<8x16xf32>
    %45 = arith.mulf %44, %43 : vector<8x16xf32>
    %46 = arith.mulf %45, %37 : vector<8x16xf32>
    %cst_27 = arith.constant dense<0.000000e+00> : vector<8x32xf32>
    %47 = tpu.matmul %46, %2, %cst_27 {dimension_numbers = #tpu.dot_dimension_numbers<[1], [0], [0], [1], [0, 0, 1, 1], [], []>} : vector<8x16xf32>, vector<16x32xf32>, vector<8x32xf32> -> vector<8x32xf32>
    %48 = arith.negf %47 : vector<8x32xf32>
    %49 = math.exp %48 : vector<8x32xf32>
    %cst_28 = arith.constant 1.000000e+00 : f32
    %50 = vector.broadcast %cst_28 : f32 to vector<8x32xf32>
    %51 = arith.addf %50, %49 : vector<8x32xf32>
    %52 = arith.divf %50, %51 : vector<8x32xf32>
    %cst_29 = arith.constant 2.000000e+00 : f32
    %53 = vector.broadcast %cst_29 : f32 to vector<8x32xf32>
    %54 = arith.mulf %53, %52 : vector<8x32xf32>
    %55 = arith.mulf %54, %35 : vector<8x32xf32>
    %cst_30 = arith.constant dense<0.000000e+00> : vector<8x16xf32>
    %56 = tpu.matmul %55, %1, %cst_30 {dimension_numbers = #tpu.dot_dimension_numbers<[1], [0], [0], [1], [0, 0, 1, 1], [], []>} : vector<8x32xf32>, vector<32x16xf32>, vector<8x16xf32> -> vector<8x16xf32>
    %57 = arith.negf %56 : vector<8x16xf32>
    %58 = math.exp %57 : vector<8x16xf32>
    %cst_31 = arith.constant 1.000000e+00 : f32
    %59 = vector.broadcast %cst_31 : f32 to vector<8x16xf32>
    %60 = arith.addf %59, %58 : vector<8x16xf32>
    %61 = arith.divf %59, %60 : vector<8x16xf32>
    %cst_32 = arith.constant 2.000000e+00 : f32
    %62 = vector.broadcast %cst_32 : f32 to vector<8x16xf32>
    %63 = arith.mulf %62, %61 : vector<8x16xf32>
    %64 = arith.mulf %63, %46 : vector<8x16xf32>
    %cst_33 = arith.constant dense<0.000000e+00> : vector<8x32xf32>
    %65 = tpu.matmul %64, %2, %cst_33 {dimension_numbers = #tpu.dot_dimension_numbers<[1], [0], [0], [1], [0, 0, 1, 1], [], []>} : vector<8x16xf32>, vector<16x32xf32>, vector<8x32xf32> -> vector<8x32xf32>
    %66 = arith.negf %65 : vector<8x32xf32>
    %67 = math.exp %66 : vector<8x32xf32>
    %cst_34 = arith.constant 1.000000e+00 : f32
    %68 = vector.broadcast %cst_34 : f32 to vector<8x32xf32>
    %69 = arith.addf %68, %67 : vector<8x32xf32>
    %70 = arith.divf %68, %69 : vector<8x32xf32>
    %cst_35 = arith.constant 2.000000e+00 : f32
    %71 = vector.broadcast %cst_35 : f32 to vector<8x32xf32>
    %72 = arith.mulf %71, %70 : vector<8x32xf32>
    %73 = arith.mulf %72, %55 : vector<8x32xf32>
    %cst_36 = arith.constant dense<0.000000e+00> : vector<8x16xf32>
    %74 = tpu.matmul %73, %1, %cst_36 {dimension_numbers = #tpu.dot_dimension_numbers<[1], [0], [0], [1], [0, 0, 1, 1], [], []>} : vector<8x32xf32>, vector<32x16xf32>, vector<8x16xf32> -> vector<8x16xf32>
    %75 = arith.negf %74 : vector<8x16xf32>
    %76 = math.exp %75 : vector<8x16xf32>
    %cst_37 = arith.constant 1.000000e+00 : f32
    %77 = vector.broadcast %cst_37 : f32 to vector<8x16xf32>
    %78 = arith.addf %77, %76 : vector<8x16xf32>
    %79 = arith.divf %77, %78 : vector<8x16xf32>
    %cst_38 = arith.constant 2.000000e+00 : f32
    %80 = vector.broadcast %cst_38 : f32 to vector<8x16xf32>
    %81 = arith.mulf %80, %79 : vector<8x16xf32>
    %82 = arith.mulf %81, %64 : vector<8x16xf32>
    %cst_39 = arith.constant dense<0.000000e+00> : vector<8x32xf32>
    %83 = tpu.matmul %82, %3, %cst_39 {dimension_numbers = #tpu.dot_dimension_numbers<[1], [0], [0], [1], [0, 0, 1, 1], [], []>} : vector<8x16xf32>, vector<16x32xf32>, vector<8x32xf32> -> vector<8x32xf32>
    %cst_40 = arith.constant dense<0.000000e+00> : vector<8x32xf32>
    %84 = tpu.matmul %73, %4, %cst_40 {dimension_numbers = #tpu.dot_dimension_numbers<[1], [0], [0], [1], [0, 0, 1, 1], [], []>} : vector<8x32xf32>, vector<32x32xf32>, vector<8x32xf32> -> vector<8x32xf32>
    %85 = arith.addf %83, %84 : vector<8x32xf32>
    %86 = arith.addf %85, %9 : vector<8x32xf32>
    %cst_41 = arith.constant dense<0.000000e+00> : vector<8x128xf32>
    %87 = tpu.matmul %82, %5, %cst_41 {dimension_numbers = #tpu.dot_dimension_numbers<[1], [0], [0], [1], [0, 0, 1, 1], [], []>} : vector<8x16xf32>, vector<16x128xf32>, vector<8x128xf32> -> vector<8x128xf32>
    %cst_42 = arith.constant dense<0.000000e+00> : vector<8x128xf32>
    %88 = tpu.matmul %86, %6, %cst_42 {dimension_numbers = #tpu.dot_dimension_numbers<[1], [0], [0], [1], [0, 0, 1, 1], [], []>} : vector<8x32xf32>, vector<32x128xf32>, vector<8x128xf32> -> vector<8x128xf32>
    %89 = arith.addf %87, %88 : vector<8x128xf32>
    %90 = arith.addf %89, %12 : vector<8x128xf32>
    %91 = arith.negf %90 : vector<8x128xf32>
    %92 = math.exp %91 : vector<8x128xf32>
    %cst_43 = arith.constant 1.000000e+00 : f32
    %93 = vector.broadcast %cst_43 : f32 to vector<8x128xf32>
    %94 = arith.addf %93, %92 : vector<8x128xf32>
    %95 = arith.divf %93, %94 : vector<8x128xf32>
    %96 = vector.extract_strided_slice %95 {offsets = [0, 0], sizes = [8, 32], strides = [1, 1]} : vector<8x128xf32> to vector<8x32xf32>
    %97 = vector.extract_strided_slice %95 {offsets = [0, 32], sizes = [8, 32], strides = [1, 1]} : vector<8x128xf32> to vector<8x32xf32>
    %98 = vector.extract_strided_slice %95 {offsets = [0, 96], sizes = [8, 32], strides = [1, 1]} : vector<8x128xf32> to vector<8x32xf32>
    %99 = vector.extract_strided_slice %90 {offsets = [0, 64], sizes = [8, 32], strides = [1, 1]} : vector<8x128xf32> to vector<8x32xf32>
    %100 = math.tanh %99 : vector<8x32xf32>
    %101 = arith.mulf %97, %33 : vector<8x32xf32>
    %102 = arith.mulf %96, %100 : vector<8x32xf32>
    %103 = arith.addf %101, %102 : vector<8x32xf32>
    %104 = math.tanh %103 : vector<8x32xf32>
    %105 = arith.mulf %98, %104 : vector<8x32xf32>
    %c2 = arith.constant 2 : index
    %c0_44 = arith.constant 0 : index
    %c0_45 = arith.constant 0 : index
    %106 = vector.load %arg1[%c2, %c0_44, %c0_45] : memref<8x8x16xf32, #tpu.memory_space<vmem>>, vector<1x8x16xf32>
    %107 = vector.shape_cast %106 : vector<1x8x16xf32> to vector<8x16xf32>
    %cst_46 = arith.constant dense<0.000000e+00> : vector<8x16xf32>
    %108 = tpu.matmul %105, %1, %cst_46 {dimension_numbers = #tpu.dot_dimension_numbers<[1], [0], [0], [1], [0, 0, 1, 1], [], []>} : vector<8x32xf32>, vector<32x16xf32>, vector<8x16xf32> -> vector<8x16xf32>
    %109 = arith.negf %108 : vector<8x16xf32>
    %110 = math.exp %109 : vector<8x16xf32>
    %cst_47 = arith.constant 1.000000e+00 : f32
    %111 = vector.broadcast %cst_47 : f32 to vector<8x16xf32>
    %112 = arith.addf %111, %110 : vector<8x16xf32>
    %113 = arith.divf %111, %112 : vector<8x16xf32>
    %cst_48 = arith.constant 2.000000e+00 : f32
    %114 = vector.broadcast %cst_48 : f32 to vector<8x16xf32>
    %115 = arith.mulf %114, %113 : vector<8x16xf32>
    %116 = arith.mulf %115, %107 : vector<8x16xf32>
    %cst_49 = arith.constant dense<0.000000e+00> : vector<8x32xf32>
    %117 = tpu.matmul %116, %2, %cst_49 {dimension_numbers = #tpu.dot_dimension_numbers<[1], [0], [0], [1], [0, 0, 1, 1], [], []>} : vector<8x16xf32>, vector<16x32xf32>, vector<8x32xf32> -> vector<8x32xf32>
    %118 = arith.negf %117 : vector<8x32xf32>
    %119 = math.exp %118 : vector<8x32xf32>
    %cst_50 = arith.constant 1.000000e+00 : f32
    %120 = vector.broadcast %cst_50 : f32 to vector<8x32xf32>
    %121 = arith.addf %120, %119 : vector<8x32xf32>
    %122 = arith.divf %120, %121 : vector<8x32xf32>
    %cst_51 = arith.constant 2.000000e+00 : f32
    %123 = vector.broadcast %cst_51 : f32 to vector<8x32xf32>
    %124 = arith.mulf %123, %122 : vector<8x32xf32>
    %125 = arith.mulf %124, %105 : vector<8x32xf32>
    %cst_52 = arith.constant dense<0.000000e+00> : vector<8x16xf32>
    %126 = tpu.matmul %125, %1, %cst_52 {dimension_numbers = #tpu.dot_dimension_numbers<[1], [0], [0], [1], [0, 0, 1, 1], [], []>} : vector<8x32xf32>, vector<32x16xf32>, vector<8x16xf32> -> vector<8x16xf32>
    %127 = arith.negf %126 : vector<8x16xf32>
    %128 = math.exp %127 : vector<8x16xf32>
    %cst_53 = arith.constant 1.000000e+00 : f32
    %129 = vector.broadcast %cst_53 : f32 to vector<8x16xf32>
    %130 = arith.addf %129, %128 : vector<8x16xf32>
    %131 = arith.divf %129, %130 : vector<8x16xf32>
    %cst_54 = arith.constant 2.000000e+00 : f32
    %132 = vector.broadcast %cst_54 : f32 to vector<8x16xf32>
    %133 = arith.mulf %132, %131 : vector<8x16xf32>
    %134 = arith.mulf %133, %116 : vector<8x16xf32>
    %cst_55 = arith.constant dense<0.000000e+00> : vector<8x32xf32>
    %135 = tpu.matmul %134, %2, %cst_55 {dimension_numbers = #tpu.dot_dimension_numbers<[1], [0], [0], [1], [0, 0, 1, 1], [], []>} : vector<8x16xf32>, vector<16x32xf32>, vector<8x32xf32> -> vector<8x32xf32>
    %136 = arith.negf %135 : vector<8x32xf32>
    %137 = math.exp %136 : vector<8x32xf32>
    %cst_56 = arith.constant 1.000000e+00 : f32
    %138 = vector.broadcast %cst_56 : f32 to vector<8x32xf32>
    %139 = arith.addf %138, %137 : vector<8x32xf32>
    %140 = arith.divf %138, %139 : vector<8x32xf32>
    %cst_57 = arith.constant 2.000000e+00 : f32
    %141 = vector.broadcast %cst_57 : f32 to vector<8x32xf32>
    %142 = arith.mulf %141, %140 : vector<8x32xf32>
    %143 = arith.mulf %142, %125 : vector<8x32xf32>
    %cst_58 = arith.constant dense<0.000000e+00> : vector<8x16xf32>
    %144 = tpu.matmul %143, %1, %cst_58 {dimension_numbers = #tpu.dot_dimension_numbers<[1], [0], [0], [1], [0, 0, 1, 1], [], []>} : vector<8x32xf32>, vector<32x16xf32>, vector<8x16xf32> -> vector<8x16xf32>
    %145 = arith.negf %144 : vector<8x16xf32>
    %146 = math.exp %145 : vector<8x16xf32>
    %cst_59 = arith.constant 1.000000e+00 : f32
    %147 = vector.broadcast %cst_59 : f32 to vector<8x16xf32>
    %148 = arith.addf %147, %146 : vector<8x16xf32>
    %149 = arith.divf %147, %148 : vector<8x16xf32>
    %cst_60 = arith.constant 2.000000e+00 : f32
    %150 = vector.broadcast %cst_60 : f32 to vector<8x16xf32>
    %151 = arith.mulf %150, %149 : vector<8x16xf32>
    %152 = arith.mulf %151, %134 : vector<8x16xf32>
    %cst_61 = arith.constant dense<0.000000e+00> : vector<8x32xf32>
    %153 = tpu.matmul %152, %3, %cst_61 {dimension_numbers = #tpu.dot_dimension_numbers<[1], [0], [0], [1], [0, 0, 1, 1], [], []>} : vector<8x16xf32>, vector<16x32xf32>, vector<8x32xf32> -> vector<8x32xf32>
    %cst_62 = arith.constant dense<0.000000e+00> : vector<8x32xf32>
    %154 = tpu.matmul %143, %4, %cst_62 {dimension_numbers = #tpu.dot_dimension_numbers<[1], [0], [0], [1], [0, 0, 1, 1], [], []>} : vector<8x32xf32>, vector<32x32xf32>, vector<8x32xf32> -> vector<8x32xf32>
    %155 = arith.addf %153, %154 : vector<8x32xf32>
    %156 = arith.addf %155, %9 : vector<8x32xf32>
    %cst_63 = arith.constant dense<0.000000e+00> : vector<8x128xf32>
    %157 = tpu.matmul %152, %5, %cst_63 {dimension_numbers = #tpu.dot_dimension_numbers<[1], [0], [0], [1], [0, 0, 1, 1], [], []>} : vector<8x16xf32>, vector<16x128xf32>, vector<8x128xf32> -> vector<8x128xf32>
    %cst_64 = arith.constant dense<0.000000e+00> : vector<8x128xf32>
    %158 = tpu.matmul %156, %6, %cst_64 {dimension_numbers = #tpu.dot_dimension_numbers<[1], [0], [0], [1], [0, 0, 1, 1], [], []>} : vector<8x32xf32>, vector<32x128xf32>, vector<8x128xf32> -> vector<8x128xf32>
    %159 = arith.addf %157, %158 : vector<8x128xf32>
    %160 = arith.addf %159, %12 : vector<8x128xf32>
    %161 = arith.negf %160 : vector<8x128xf32>
    %162 = math.exp %161 : vector<8x128xf32>
    %cst_65 = arith.constant 1.000000e+00 : f32
    %163 = vector.broadcast %cst_65 : f32 to vector<8x128xf32>
    %164 = arith.addf %163, %162 : vector<8x128xf32>
    %165 = arith.divf %163, %164 : vector<8x128xf32>
    %166 = vector.extract_strided_slice %165 {offsets = [0, 0], sizes = [8, 32], strides = [1, 1]} : vector<8x128xf32> to vector<8x32xf32>
    %167 = vector.extract_strided_slice %165 {offsets = [0, 32], sizes = [8, 32], strides = [1, 1]} : vector<8x128xf32> to vector<8x32xf32>
    %168 = vector.extract_strided_slice %165 {offsets = [0, 96], sizes = [8, 32], strides = [1, 1]} : vector<8x128xf32> to vector<8x32xf32>
    %169 = vector.extract_strided_slice %160 {offsets = [0, 64], sizes = [8, 32], strides = [1, 1]} : vector<8x128xf32> to vector<8x32xf32>
    %170 = math.tanh %169 : vector<8x32xf32>
    %171 = arith.mulf %167, %103 : vector<8x32xf32>
    %172 = arith.mulf %166, %170 : vector<8x32xf32>
    %173 = arith.addf %171, %172 : vector<8x32xf32>
    %174 = math.tanh %173 : vector<8x32xf32>
    %175 = arith.mulf %168, %174 : vector<8x32xf32>
    %c3 = arith.constant 3 : index
    %c0_66 = arith.constant 0 : index
    %c0_67 = arith.constant 0 : index
    %176 = vector.load %arg1[%c3, %c0_66, %c0_67] : memref<8x8x16xf32, #tpu.memory_space<vmem>>, vector<1x8x16xf32>
    %177 = vector.shape_cast %176 : vector<1x8x16xf32> to vector<8x16xf32>
    %cst_68 = arith.constant dense<0.000000e+00> : vector<8x16xf32>
    %178 = tpu.matmul %175, %1, %cst_68 {dimension_numbers = #tpu.dot_dimension_numbers<[1], [0], [0], [1], [0, 0, 1, 1], [], []>} : vector<8x32xf32>, vector<32x16xf32>, vector<8x16xf32> -> vector<8x16xf32>
    %179 = arith.negf %178 : vector<8x16xf32>
    %180 = math.exp %179 : vector<8x16xf32>
    %cst_69 = arith.constant 1.000000e+00 : f32
    %181 = vector.broadcast %cst_69 : f32 to vector<8x16xf32>
    %182 = arith.addf %181, %180 : vector<8x16xf32>
    %183 = arith.divf %181, %182 : vector<8x16xf32>
    %cst_70 = arith.constant 2.000000e+00 : f32
    %184 = vector.broadcast %cst_70 : f32 to vector<8x16xf32>
    %185 = arith.mulf %184, %183 : vector<8x16xf32>
    %186 = arith.mulf %185, %177 : vector<8x16xf32>
    %cst_71 = arith.constant dense<0.000000e+00> : vector<8x32xf32>
    %187 = tpu.matmul %186, %2, %cst_71 {dimension_numbers = #tpu.dot_dimension_numbers<[1], [0], [0], [1], [0, 0, 1, 1], [], []>} : vector<8x16xf32>, vector<16x32xf32>, vector<8x32xf32> -> vector<8x32xf32>
    %188 = arith.negf %187 : vector<8x32xf32>
    %189 = math.exp %188 : vector<8x32xf32>
    %cst_72 = arith.constant 1.000000e+00 : f32
    %190 = vector.broadcast %cst_72 : f32 to vector<8x32xf32>
    %191 = arith.addf %190, %189 : vector<8x32xf32>
    %192 = arith.divf %190, %191 : vector<8x32xf32>
    %cst_73 = arith.constant 2.000000e+00 : f32
    %193 = vector.broadcast %cst_73 : f32 to vector<8x32xf32>
    %194 = arith.mulf %193, %192 : vector<8x32xf32>
    %195 = arith.mulf %194, %175 : vector<8x32xf32>
    %cst_74 = arith.constant dense<0.000000e+00> : vector<8x16xf32>
    %196 = tpu.matmul %195, %1, %cst_74 {dimension_numbers = #tpu.dot_dimension_numbers<[1], [0], [0], [1], [0, 0, 1, 1], [], []>} : vector<8x32xf32>, vector<32x16xf32>, vector<8x16xf32> -> vector<8x16xf32>
    %197 = arith.negf %196 : vector<8x16xf32>
    %198 = math.exp %197 : vector<8x16xf32>
    %cst_75 = arith.constant 1.000000e+00 : f32
    %199 = vector.broadcast %cst_75 : f32 to vector<8x16xf32>
    %200 = arith.addf %199, %198 : vector<8x16xf32>
    %201 = arith.divf %199, %200 : vector<8x16xf32>
    %cst_76 = arith.constant 2.000000e+00 : f32
    %202 = vector.broadcast %cst_76 : f32 to vector<8x16xf32>
    %203 = arith.mulf %202, %201 : vector<8x16xf32>
    %204 = arith.mulf %203, %186 : vector<8x16xf32>
    %cst_77 = arith.constant dense<0.000000e+00> : vector<8x32xf32>
    %205 = tpu.matmul %204, %2, %cst_77 {dimension_numbers = #tpu.dot_dimension_numbers<[1], [0], [0], [1], [0, 0, 1, 1], [], []>} : vector<8x16xf32>, vector<16x32xf32>, vector<8x32xf32> -> vector<8x32xf32>
    %206 = arith.negf %205 : vector<8x32xf32>
    %207 = math.exp %206 : vector<8x32xf32>
    %cst_78 = arith.constant 1.000000e+00 : f32
    %208 = vector.broadcast %cst_78 : f32 to vector<8x32xf32>
    %209 = arith.addf %208, %207 : vector<8x32xf32>
    %210 = arith.divf %208, %209 : vector<8x32xf32>
    %cst_79 = arith.constant 2.000000e+00 : f32
    %211 = vector.broadcast %cst_79 : f32 to vector<8x32xf32>
    %212 = arith.mulf %211, %210 : vector<8x32xf32>
    %213 = arith.mulf %212, %195 : vector<8x32xf32>
    %cst_80 = arith.constant dense<0.000000e+00> : vector<8x16xf32>
    %214 = tpu.matmul %213, %1, %cst_80 {dimension_numbers = #tpu.dot_dimension_numbers<[1], [0], [0], [1], [0, 0, 1, 1], [], []>} : vector<8x32xf32>, vector<32x16xf32>, vector<8x16xf32> -> vector<8x16xf32>
    %215 = arith.negf %214 : vector<8x16xf32>
    %216 = math.exp %215 : vector<8x16xf32>
    %cst_81 = arith.constant 1.000000e+00 : f32
    %217 = vector.broadcast %cst_81 : f32 to vector<8x16xf32>
    %218 = arith.addf %217, %216 : vector<8x16xf32>
    %219 = arith.divf %217, %218 : vector<8x16xf32>
    %cst_82 = arith.constant 2.000000e+00 : f32
    %220 = vector.broadcast %cst_82 : f32 to vector<8x16xf32>
    %221 = arith.mulf %220, %219 : vector<8x16xf32>
    %222 = arith.mulf %221, %204 : vector<8x16xf32>
    %cst_83 = arith.constant dense<0.000000e+00> : vector<8x32xf32>
    %223 = tpu.matmul %222, %3, %cst_83 {dimension_numbers = #tpu.dot_dimension_numbers<[1], [0], [0], [1], [0, 0, 1, 1], [], []>} : vector<8x16xf32>, vector<16x32xf32>, vector<8x32xf32> -> vector<8x32xf32>
    %cst_84 = arith.constant dense<0.000000e+00> : vector<8x32xf32>
    %224 = tpu.matmul %213, %4, %cst_84 {dimension_numbers = #tpu.dot_dimension_numbers<[1], [0], [0], [1], [0, 0, 1, 1], [], []>} : vector<8x32xf32>, vector<32x32xf32>, vector<8x32xf32> -> vector<8x32xf32>
    %225 = arith.addf %223, %224 : vector<8x32xf32>
    %226 = arith.addf %225, %9 : vector<8x32xf32>
    %cst_85 = arith.constant dense<0.000000e+00> : vector<8x128xf32>
    %227 = tpu.matmul %222, %5, %cst_85 {dimension_numbers = #tpu.dot_dimension_numbers<[1], [0], [0], [1], [0, 0, 1, 1], [], []>} : vector<8x16xf32>, vector<16x128xf32>, vector<8x128xf32> -> vector<8x128xf32>
    %cst_86 = arith.constant dense<0.000000e+00> : vector<8x128xf32>
    %228 = tpu.matmul %226, %6, %cst_86 {dimension_numbers = #tpu.dot_dimension_numbers<[1], [0], [0], [1], [0, 0, 1, 1], [], []>} : vector<8x32xf32>, vector<32x128xf32>, vector<8x128xf32> -> vector<8x128xf32>
    %229 = arith.addf %227, %228 : vector<8x128xf32>
    %230 = arith.addf %229, %12 : vector<8x128xf32>
    %231 = arith.negf %230 : vector<8x128xf32>
    %232 = math.exp %231 : vector<8x128xf32>
    %cst_87 = arith.constant 1.000000e+00 : f32
    %233 = vector.broadcast %cst_87 : f32 to vector<8x128xf32>
    %234 = arith.addf %233, %232 : vector<8x128xf32>
    %235 = arith.divf %233, %234 : vector<8x128xf32>
    %236 = vector.extract_strided_slice %235 {offsets = [0, 0], sizes = [8, 32], strides = [1, 1]} : vector<8x128xf32> to vector<8x32xf32>
    %237 = vector.extract_strided_slice %235 {offsets = [0, 32], sizes = [8, 32], strides = [1, 1]} : vector<8x128xf32> to vector<8x32xf32>
    %238 = vector.extract_strided_slice %235 {offsets = [0, 96], sizes = [8, 32], strides = [1, 1]} : vector<8x128xf32> to vector<8x32xf32>
    %239 = vector.extract_strided_slice %230 {offsets = [0, 64], sizes = [8, 32], strides = [1, 1]} : vector<8x128xf32> to vector<8x32xf32>
    %240 = math.tanh %239 : vector<8x32xf32>
    %241 = arith.mulf %237, %173 : vector<8x32xf32>
    %242 = arith.mulf %236, %240 : vector<8x32xf32>
    %243 = arith.addf %241, %242 : vector<8x32xf32>
    %244 = math.tanh %243 : vector<8x32xf32>
    %245 = arith.mulf %238, %244 : vector<8x32xf32>
    %246 = tpu.concatenate %35, %105, %175, %245 in 1 : vector<8x32xf32>, vector<8x32xf32>, vector<8x32xf32>, vector<8x32xf32> -> vector<8x128xf32>
    %c0_88 = arith.constant 0 : index
    %c0_89 = arith.constant 0 : index
    %247 = vector.load %arg10[%c0_88, %c0_89] : memref<8x256xf32, #tpu.memory_space<vmem>>, vector<8x128xf32>
    tpu.vector_store %arg10[%c0_88, %c0_89], %246 {strides = array<i32>} : memref<8x256xf32, #tpu.memory_space<vmem>>, vector<8x128xf32>,
    %c4 = arith.constant 4 : index
    %c0_90 = arith.constant 0 : index
    %c0_91 = arith.constant 0 : index
    %248 = vector.load %arg1[%c4, %c0_90, %c0_91] : memref<8x8x16xf32, #tpu.memory_space<vmem>>, vector<1x8x16xf32>
    %249 = vector.shape_cast %248 : vector<1x8x16xf32> to vector<8x16xf32>
    %cst_92 = arith.constant dense<0.000000e+00> : vector<8x16xf32>
    %250 = tpu.matmul %245, %1, %cst_92 {dimension_numbers = #tpu.dot_dimension_numbers<[1], [0], [0], [1], [0, 0, 1, 1], [], []>} : vector<8x32xf32>, vector<32x16xf32>, vector<8x16xf32> -> vector<8x16xf32>
    %251 = arith.negf %250 : vector<8x16xf32>
    %252 = math.exp %251 : vector<8x16xf32>
    %cst_93 = arith.constant 1.000000e+00 : f32
    %253 = vector.broadcast %cst_93 : f32 to vector<8x16xf32>
    %254 = arith.addf %253, %252 : vector<8x16xf32>
    %255 = arith.divf %253, %254 : vector<8x16xf32>
    %cst_94 = arith.constant 2.000000e+00 : f32
    %256 = vector.broadcast %cst_94 : f32 to vector<8x16xf32>
    %257 = arith.mulf %256, %255 : vector<8x16xf32>
    %258 = arith.mulf %257, %249 : vector<8x16xf32>
    %cst_95 = arith.constant dense<0.000000e+00> : vector<8x32xf32>
    %259 = tpu.matmul %258, %2, %cst_95 {dimension_numbers = #tpu.dot_dimension_numbers<[1], [0], [0], [1], [0, 0, 1, 1], [], []>} : vector<8x16xf32>, vector<16x32xf32>, vector<8x32xf32> -> vector<8x32xf32>
    %260 = arith.negf %259 : vector<8x32xf32>
    %261 = math.exp %260 : vector<8x32xf32>
    %cst_96 = arith.constant 1.000000e+00 : f32
    %262 = vector.broadcast %cst_96 : f32 to vector<8x32xf32>
    %263 = arith.addf %262, %261 : vector<8x32xf32>
    %264 = arith.divf %262, %263 : vector<8x32xf32>
    %cst_97 = arith.constant 2.000000e+00 : f32
    %265 = vector.broadcast %cst_97 : f32 to vector<8x32xf32>
    %266 = arith.mulf %265, %264 : vector<8x32xf32>
    %267 = arith.mulf %266, %245 : vector<8x32xf32>
    %cst_98 = arith.constant dense<0.000000e+00> : vector<8x16xf32>
    %268 = tpu.matmul %267, %1, %cst_98 {dimension_numbers = #tpu.dot_dimension_numbers<[1], [0], [0], [1], [0, 0, 1, 1], [], []>} : vector<8x32xf32>, vector<32x16xf32>, vector<8x16xf32> -> vector<8x16xf32>
    %269 = arith.negf %268 : vector<8x16xf32>
    %270 = math.exp %269 : vector<8x16xf32>
    %cst_99 = arith.constant 1.000000e+00 : f32
    %271 = vector.broadcast %cst_99 : f32 to vector<8x16xf32>
    %272 = arith.addf %271, %270 : vector<8x16xf32>
    %273 = arith.divf %271, %272 : vector<8x16xf32>
    %cst_100 = arith.constant 2.000000e+00 : f32
    %274 = vector.broadcast %cst_100 : f32 to vector<8x16xf32>
    %275 = arith.mulf %274, %273 : vector<8x16xf32>
    %276 = arith.mulf %275, %258 : vector<8x16xf32>
    %cst_101 = arith.constant dense<0.000000e+00> : vector<8x32xf32>
    %277 = tpu.matmul %276, %2, %cst_101 {dimension_numbers = #tpu.dot_dimension_numbers<[1], [0], [0], [1], [0, 0, 1, 1], [], []>} : vector<8x16xf32>, vector<16x32xf32>, vector<8x32xf32> -> vector<8x32xf32>
    %278 = arith.negf %277 : vector<8x32xf32>
    %279 = math.exp %278 : vector<8x32xf32>
    %cst_102 = arith.constant 1.000000e+00 : f32
    %280 = vector.broadcast %cst_102 : f32 to vector<8x32xf32>
    %281 = arith.addf %280, %279 : vector<8x32xf32>
    %282 = arith.divf %280, %281 : vector<8x32xf32>
    %cst_103 = arith.constant 2.000000e+00 : f32
    %283 = vector.broadcast %cst_103 : f32 to vector<8x32xf32>
    %284 = arith.mulf %283, %282 : vector<8x32xf32>
    %285 = arith.mulf %284, %267 : vector<8x32xf32>
    %cst_104 = arith.constant dense<0.000000e+00> : vector<8x16xf32>
    %286 = tpu.matmul %285, %1, %cst_104 {dimension_numbers = #tpu.dot_dimension_numbers<[1], [0], [0], [1], [0, 0, 1, 1], [], []>} : vector<8x32xf32>, vector<32x16xf32>, vector<8x16xf32> -> vector<8x16xf32>
    %287 = arith.negf %286 : vector<8x16xf32>
    %288 = math.exp %287 : vector<8x16xf32>
    %cst_105 = arith.constant 1.000000e+00 : f32
    %289 = vector.broadcast %cst_105 : f32 to vector<8x16xf32>
    %290 = arith.addf %289, %288 : vector<8x16xf32>
    %291 = arith.divf %289, %290 : vector<8x16xf32>
    %cst_106 = arith.constant 2.000000e+00 : f32
    %292 = vector.broadcast %cst_106 : f32 to vector<8x16xf32>
    %293 = arith.mulf %292, %291 : vector<8x16xf32>
    %294 = arith.mulf %293, %276 : vector<8x16xf32>
    %cst_107 = arith.constant dense<0.000000e+00> : vector<8x32xf32>
    %295 = tpu.matmul %294, %3, %cst_107 {dimension_numbers = #tpu.dot_dimension_numbers<[1], [0], [0], [1], [0, 0, 1, 1], [], []>} : vector<8x16xf32>, vector<16x32xf32>, vector<8x32xf32> -> vector<8x32xf32>
    %cst_108 = arith.constant dense<0.000000e+00> : vector<8x32xf32>
    %296 = tpu.matmul %285, %4, %cst_108 {dimension_numbers = #tpu.dot_dimension_numbers<[1], [0], [0], [1], [0, 0, 1, 1], [], []>} : vector<8x32xf32>, vector<32x32xf32>, vector<8x32xf32> -> vector<8x32xf32>
    %297 = arith.addf %295, %296 : vector<8x32xf32>
    %298 = arith.addf %297, %9 : vector<8x32xf32>
    %cst_109 = arith.constant dense<0.000000e+00> : vector<8x128xf32>
    %299 = tpu.matmul %294, %5, %cst_109 {dimension_numbers = #tpu.dot_dimension_numbers<[1], [0], [0], [1], [0, 0, 1, 1], [], []>} : vector<8x16xf32>, vector<16x128xf32>, vector<8x128xf32> -> vector<8x128xf32>
    %cst_110 = arith.constant dense<0.000000e+00> : vector<8x128xf32>
    %300 = tpu.matmul %298, %6, %cst_110 {dimension_numbers = #tpu.dot_dimension_numbers<[1], [0], [0], [1], [0, 0, 1, 1], [], []>} : vector<8x32xf32>, vector<32x128xf32>, vector<8x128xf32> -> vector<8x128xf32>
    %301 = arith.addf %299, %300 : vector<8x128xf32>
    %302 = arith.addf %301, %12 : vector<8x128xf32>
    %303 = arith.negf %302 : vector<8x128xf32>
    %304 = math.exp %303 : vector<8x128xf32>
    %cst_111 = arith.constant 1.000000e+00 : f32
    %305 = vector.broadcast %cst_111 : f32 to vector<8x128xf32>
    %306 = arith.addf %305, %304 : vector<8x128xf32>
    %307 = arith.divf %305, %306 : vector<8x128xf32>
    %308 = vector.extract_strided_slice %307 {offsets = [0, 0], sizes = [8, 32], strides = [1, 1]} : vector<8x128xf32> to vector<8x32xf32>
    %309 = vector.extract_strided_slice %307 {offsets = [0, 32], sizes = [8, 32], strides = [1, 1]} : vector<8x128xf32> to vector<8x32xf32>
    %310 = vector.extract_strided_slice %307 {offsets = [0, 96], sizes = [8, 32], strides = [1, 1]} : vector<8x128xf32> to vector<8x32xf32>
    %311 = vector.extract_strided_slice %302 {offsets = [0, 64], sizes = [8, 32], strides = [1, 1]} : vector<8x128xf32> to vector<8x32xf32>
    %312 = math.tanh %311 : vector<8x32xf32>
    %313 = arith.mulf %309, %243 : vector<8x32xf32>
    %314 = arith.mulf %308, %312 : vector<8x32xf32>
    %315 = arith.addf %313, %314 : vector<8x32xf32>
    %316 = math.tanh %315 : vector<8x32xf32>
    %317 = arith.mulf %310, %316 : vector<8x32xf32>
    %c5 = arith.constant 5 : index
    %c0_112 = arith.constant 0 : index
    %c0_113 = arith.constant 0 : index
    %318 = vector.load %arg1[%c5, %c0_112, %c0_113] : memref<8x8x16xf32, #tpu.memory_space<vmem>>, vector<1x8x16xf32>
    %319 = vector.shape_cast %318 : vector<1x8x16xf32> to vector<8x16xf32>
    %cst_114 = arith.constant dense<0.000000e+00> : vector<8x16xf32>
    %320 = tpu.matmul %317, %1, %cst_114 {dimension_numbers = #tpu.dot_dimension_numbers<[1], [0], [0], [1], [0, 0, 1, 1], [], []>} : vector<8x32xf32>, vector<32x16xf32>, vector<8x16xf32> -> vector<8x16xf32>
    %321 = arith.negf %320 : vector<8x16xf32>
    %322 = math.exp %321 : vector<8x16xf32>
    %cst_115 = arith.constant 1.000000e+00 : f32
    %323 = vector.broadcast %cst_115 : f32 to vector<8x16xf32>
    %324 = arith.addf %323, %322 : vector<8x16xf32>
    %325 = arith.divf %323, %324 : vector<8x16xf32>
    %cst_116 = arith.constant 2.000000e+00 : f32
    %326 = vector.broadcast %cst_116 : f32 to vector<8x16xf32>
    %327 = arith.mulf %326, %325 : vector<8x16xf32>
    %328 = arith.mulf %327, %319 : vector<8x16xf32>
    %cst_117 = arith.constant dense<0.000000e+00> : vector<8x32xf32>
    %329 = tpu.matmul %328, %2, %cst_117 {dimension_numbers = #tpu.dot_dimension_numbers<[1], [0], [0], [1], [0, 0, 1, 1], [], []>} : vector<8x16xf32>, vector<16x32xf32>, vector<8x32xf32> -> vector<8x32xf32>
    %330 = arith.negf %329 : vector<8x32xf32>
    %331 = math.exp %330 : vector<8x32xf32>
    %cst_118 = arith.constant 1.000000e+00 : f32
    %332 = vector.broadcast %cst_118 : f32 to vector<8x32xf32>
    %333 = arith.addf %332, %331 : vector<8x32xf32>
    %334 = arith.divf %332, %333 : vector<8x32xf32>
    %cst_119 = arith.constant 2.000000e+00 : f32
    %335 = vector.broadcast %cst_119 : f32 to vector<8x32xf32>
    %336 = arith.mulf %335, %334 : vector<8x32xf32>
    %337 = arith.mulf %336, %317 : vector<8x32xf32>
    %cst_120 = arith.constant dense<0.000000e+00> : vector<8x16xf32>
    %338 = tpu.matmul %337, %1, %cst_120 {dimension_numbers = #tpu.dot_dimension_numbers<[1], [0], [0], [1], [0, 0, 1, 1], [], []>} : vector<8x32xf32>, vector<32x16xf32>, vector<8x16xf32> -> vector<8x16xf32>
    %339 = arith.negf %338 : vector<8x16xf32>
    %340 = math.exp %339 : vector<8x16xf32>
    %cst_121 = arith.constant 1.000000e+00 : f32
    %341 = vector.broadcast %cst_121 : f32 to vector<8x16xf32>
    %342 = arith.addf %341, %340 : vector<8x16xf32>
    %343 = arith.divf %341, %342 : vector<8x16xf32>
    %cst_122 = arith.constant 2.000000e+00 : f32
    %344 = vector.broadcast %cst_122 : f32 to vector<8x16xf32>
    %345 = arith.mulf %344, %343 : vector<8x16xf32>
    %346 = arith.mulf %345, %328 : vector<8x16xf32>
    %cst_123 = arith.constant dense<0.000000e+00> : vector<8x32xf32>
    %347 = tpu.matmul %346, %2, %cst_123 {dimension_numbers = #tpu.dot_dimension_numbers<[1], [0], [0], [1], [0, 0, 1, 1], [], []>} : vector<8x16xf32>, vector<16x32xf32>, vector<8x32xf32> -> vector<8x32xf32>
    %348 = arith.negf %347 : vector<8x32xf32>
    %349 = math.exp %348 : vector<8x32xf32>
    %cst_124 = arith.constant 1.000000e+00 : f32
    %350 = vector.broadcast %cst_124 : f32 to vector<8x32xf32>
    %351 = arith.addf %350, %349 : vector<8x32xf32>
    %352 = arith.divf %350, %351 : vector<8x32xf32>
    %cst_125 = arith.constant 2.000000e+00 : f32
    %353 = vector.broadcast %cst_125 : f32 to vector<8x32xf32>
    %354 = arith.mulf %353, %352 : vector<8x32xf32>
    %355 = arith.mulf %354, %337 : vector<8x32xf32>
    %cst_126 = arith.constant dense<0.000000e+00> : vector<8x16xf32>
    %356 = tpu.matmul %355, %1, %cst_126 {dimension_numbers = #tpu.dot_dimension_numbers<[1], [0], [0], [1], [0, 0, 1, 1], [], []>} : vector<8x32xf32>, vector<32x16xf32>, vector<8x16xf32> -> vector<8x16xf32>
    %357 = arith.negf %356 : vector<8x16xf32>
    %358 = math.exp %357 : vector<8x16xf32>
    %cst_127 = arith.constant 1.000000e+00 : f32
    %359 = vector.broadcast %cst_127 : f32 to vector<8x16xf32>
    %360 = arith.addf %359, %358 : vector<8x16xf32>
    %361 = arith.divf %359, %360 : vector<8x16xf32>
    %cst_128 = arith.constant 2.000000e+00 : f32
    %362 = vector.broadcast %cst_128 : f32 to vector<8x16xf32>
    %363 = arith.mulf %362, %361 : vector<8x16xf32>
    %364 = arith.mulf %363, %346 : vector<8x16xf32>
    %cst_129 = arith.constant dense<0.000000e+00> : vector<8x32xf32>
    %365 = tpu.matmul %364, %3, %cst_129 {dimension_numbers = #tpu.dot_dimension_numbers<[1], [0], [0], [1], [0, 0, 1, 1], [], []>} : vector<8x16xf32>, vector<16x32xf32>, vector<8x32xf32> -> vector<8x32xf32>
    %cst_130 = arith.constant dense<0.000000e+00> : vector<8x32xf32>
    %366 = tpu.matmul %355, %4, %cst_130 {dimension_numbers = #tpu.dot_dimension_numbers<[1], [0], [0], [1], [0, 0, 1, 1], [], []>} : vector<8x32xf32>, vector<32x32xf32>, vector<8x32xf32> -> vector<8x32xf32>
    %367 = arith.addf %365, %366 : vector<8x32xf32>
    %368 = arith.addf %367, %9 : vector<8x32xf32>
    %cst_131 = arith.constant dense<0.000000e+00> : vector<8x128xf32>
    %369 = tpu.matmul %364, %5, %cst_131 {dimension_numbers = #tpu.dot_dimension_numbers<[1], [0], [0], [1], [0, 0, 1, 1], [], []>} : vector<8x16xf32>, vector<16x128xf32>, vector<8x128xf32> -> vector<8x128xf32>
    %cst_132 = arith.constant dense<0.000000e+00> : vector<8x128xf32>
    %370 = tpu.matmul %368, %6, %cst_132 {dimension_numbers = #tpu.dot_dimension_numbers<[1], [0], [0], [1], [0, 0, 1, 1], [], []>} : vector<8x32xf32>, vector<32x128xf32>, vector<8x128xf32> -> vector<8x128xf32>
    %371 = arith.addf %369, %370 : vector<8x128xf32>
    %372 = arith.addf %371, %12 : vector<8x128xf32>
    %373 = arith.negf %372 : vector<8x128xf32>
    %374 = math.exp %373 : vector<8x128xf32>
    %cst_133 = arith.constant 1.000000e+00 : f32
    %375 = vector.broadcast %cst_133 : f32 to vector<8x128xf32>
    %376 = arith.addf %375, %374 : vector<8x128xf32>
    %377 = arith.divf %375, %376 : vector<8x128xf32>
    %378 = vector.extract_strided_slice %377 {offsets = [0, 0], sizes = [8, 32], strides = [1, 1]} : vector<8x128xf32> to vector<8x32xf32>
    %379 = vector.extract_strided_slice %377 {offsets = [0, 32], sizes = [8, 32], strides = [1, 1]} : vector<8x128xf32> to vector<8x32xf32>
    %380 = vector.extract_strided_slice %377 {offsets = [0, 96], sizes = [8, 32], strides = [1, 1]} : vector<8x128xf32> to vector<8x32xf32>
    %381 = vector.extract_strided_slice %372 {offsets = [0, 64], sizes = [8, 32], strides = [1, 1]} : vector<8x128xf32> to vector<8x32xf32>
    %382 = math.tanh %381 : vector<8x32xf32>
    %383 = arith.mulf %379, %315 : vector<8x32xf32>
    %384 = arith.mulf %378, %382 : vector<8x32xf32>
    %385 = arith.addf %383, %384 : vector<8x32xf32>
    %386 = math.tanh %385 : vector<8x32xf32>
    %387 = arith.mulf %380, %386 : vector<8x32xf32>
    %c6 = arith.constant 6 : index
    %c0_134 = arith.constant 0 : index
    %c0_135 = arith.constant 0 : index
    %388 = vector.load %arg1[%c6, %c0_134, %c0_135] : memref<8x8x16xf32, #tpu.memory_space<vmem>>, vector<1x8x16xf32>
    %389 = vector.shape_cast %388 : vector<1x8x16xf32> to vector<8x16xf32>
    %cst_136 = arith.constant dense<0.000000e+00> : vector<8x16xf32>
    %390 = tpu.matmul %387, %1, %cst_136 {dimension_numbers = #tpu.dot_dimension_numbers<[1], [0], [0], [1], [0, 0, 1, 1], [], []>} : vector<8x32xf32>, vector<32x16xf32>, vector<8x16xf32> -> vector<8x16xf32>
    %391 = arith.negf %390 : vector<8x16xf32>
    %392 = math.exp %391 : vector<8x16xf32>
    %cst_137 = arith.constant 1.000000e+00 : f32
    %393 = vector.broadcast %cst_137 : f32 to vector<8x16xf32>
    %394 = arith.addf %393, %392 : vector<8x16xf32>
    %395 = arith.divf %393, %394 : vector<8x16xf32>
    %cst_138 = arith.constant 2.000000e+00 : f32
    %396 = vector.broadcast %cst_138 : f32 to vector<8x16xf32>
    %397 = arith.mulf %396, %395 : vector<8x16xf32>
    %398 = arith.mulf %397, %389 : vector<8x16xf32>
    %cst_139 = arith.constant dense<0.000000e+00> : vector<8x32xf32>
    %399 = tpu.matmul %398, %2, %cst_139 {dimension_numbers = #tpu.dot_dimension_numbers<[1], [0], [0], [1], [0, 0, 1, 1], [], []>} : vector<8x16xf32>, vector<16x32xf32>, vector<8x32xf32> -> vector<8x32xf32>
    %400 = arith.negf %399 : vector<8x32xf32>
    %401 = math.exp %400 : vector<8x32xf32>
    %cst_140 = arith.constant 1.000000e+00 : f32
    %402 = vector.broadcast %cst_140 : f32 to vector<8x32xf32>
    %403 = arith.addf %402, %401 : vector<8x32xf32>
    %404 = arith.divf %402, %403 : vector<8x32xf32>
    %cst_141 = arith.constant 2.000000e+00 : f32
    %405 = vector.broadcast %cst_141 : f32 to vector<8x32xf32>
    %406 = arith.mulf %405, %404 : vector<8x32xf32>
    %407 = arith.mulf %406, %387 : vector<8x32xf32>
    %cst_142 = arith.constant dense<0.000000e+00> : vector<8x16xf32>
    %408 = tpu.matmul %407, %1, %cst_142 {dimension_numbers = #tpu.dot_dimension_numbers<[1], [0], [0], [1], [0, 0, 1, 1], [], []>} : vector<8x32xf32>, vector<32x16xf32>, vector<8x16xf32> -> vector<8x16xf32>
    %409 = arith.negf %408 : vector<8x16xf32>
    %410 = math.exp %409 : vector<8x16xf32>
    %cst_143 = arith.constant 1.000000e+00 : f32
    %411 = vector.broadcast %cst_143 : f32 to vector<8x16xf32>
    %412 = arith.addf %411, %410 : vector<8x16xf32>
    %413 = arith.divf %411, %412 : vector<8x16xf32>
    %cst_144 = arith.constant 2.000000e+00 : f32
    %414 = vector.broadcast %cst_144 : f32 to vector<8x16xf32>
    %415 = arith.mulf %414, %413 : vector<8x16xf32>
    %416 = arith.mulf %415, %398 : vector<8x16xf32>
    %cst_145 = arith.constant dense<0.000000e+00> : vector<8x32xf32>
    %417 = tpu.matmul %416, %2, %cst_145 {dimension_numbers = #tpu.dot_dimension_numbers<[1], [0], [0], [1], [0, 0, 1, 1], [], []>} : vector<8x16xf32>, vector<16x32xf32>, vector<8x32xf32> -> vector<8x32xf32>
    %418 = arith.negf %417 : vector<8x32xf32>
    %419 = math.exp %418 : vector<8x32xf32>
    %cst_146 = arith.constant 1.000000e+00 : f32
    %420 = vector.broadcast %cst_146 : f32 to vector<8x32xf32>
    %421 = arith.addf %420, %419 : vector<8x32xf32>
    %422 = arith.divf %420, %421 : vector<8x32xf32>
    %cst_147 = arith.constant 2.000000e+00 : f32
    %423 = vector.broadcast %cst_147 : f32 to vector<8x32xf32>
    %424 = arith.mulf %423, %422 : vector<8x32xf32>
    %425 = arith.mulf %424, %407 : vector<8x32xf32>
    %cst_148 = arith.constant dense<0.000000e+00> : vector<8x16xf32>
    %426 = tpu.matmul %425, %1, %cst_148 {dimension_numbers = #tpu.dot_dimension_numbers<[1], [0], [0], [1], [0, 0, 1, 1], [], []>} : vector<8x32xf32>, vector<32x16xf32>, vector<8x16xf32> -> vector<8x16xf32>
    %427 = arith.negf %426 : vector<8x16xf32>
    %428 = math.exp %427 : vector<8x16xf32>
    %cst_149 = arith.constant 1.000000e+00 : f32
    %429 = vector.broadcast %cst_149 : f32 to vector<8x16xf32>
    %430 = arith.addf %429, %428 : vector<8x16xf32>
    %431 = arith.divf %429, %430 : vector<8x16xf32>
    %cst_150 = arith.constant 2.000000e+00 : f32
    %432 = vector.broadcast %cst_150 : f32 to vector<8x16xf32>
    %433 = arith.mulf %432, %431 : vector<8x16xf32>
    %434 = arith.mulf %433, %416 : vector<8x16xf32>
    %cst_151 = arith.constant dense<0.000000e+00> : vector<8x32xf32>
    %435 = tpu.matmul %434, %3, %cst_151 {dimension_numbers = #tpu.dot_dimension_numbers<[1], [0], [0], [1], [0, 0, 1, 1], [], []>} : vector<8x16xf32>, vector<16x32xf32>, vector<8x32xf32> -> vector<8x32xf32>
    %cst_152 = arith.constant dense<0.000000e+00> : vector<8x32xf32>
    %436 = tpu.matmul %425, %4, %cst_152 {dimension_numbers = #tpu.dot_dimension_numbers<[1], [0], [0], [1], [0, 0, 1, 1], [], []>} : vector<8x32xf32>, vector<32x32xf32>, vector<8x32xf32> -> vector<8x32xf32>
    %437 = arith.addf %435, %436 : vector<8x32xf32>
    %438 = arith.addf %437, %9 : vector<8x32xf32>
    %cst_153 = arith.constant dense<0.000000e+00> : vector<8x128xf32>
    %439 = tpu.matmul %434, %5, %cst_153 {dimension_numbers = #tpu.dot_dimension_numbers<[1], [0], [0], [1], [0, 0, 1, 1], [], []>} : vector<8x16xf32>, vector<16x128xf32>, vector<8x128xf32> -> vector<8x128xf32>
    %cst_154 = arith.constant dense<0.000000e+00> : vector<8x128xf32>
    %440 = tpu.matmul %438, %6, %cst_154 {dimension_numbers = #tpu.dot_dimension_numbers<[1], [0], [0], [1], [0, 0, 1, 1], [], []>} : vector<8x32xf32>, vector<32x128xf32>, vector<8x128xf32> -> vector<8x128xf32>
    %441 = arith.addf %439, %440 : vector<8x128xf32>
    %442 = arith.addf %441, %12 : vector<8x128xf32>
    %443 = arith.negf %442 : vector<8x128xf32>
    %444 = math.exp %443 : vector<8x128xf32>
    %cst_155 = arith.constant 1.000000e+00 : f32
    %445 = vector.broadcast %cst_155 : f32 to vector<8x128xf32>
    %446 = arith.addf %445, %444 : vector<8x128xf32>
    %447 = arith.divf %445, %446 : vector<8x128xf32>
    %448 = vector.extract_strided_slice %447 {offsets = [0, 0], sizes = [8, 32], strides = [1, 1]} : vector<8x128xf32> to vector<8x32xf32>
    %449 = vector.extract_strided_slice %447 {offsets = [0, 32], sizes = [8, 32], strides = [1, 1]} : vector<8x128xf32> to vector<8x32xf32>
    %450 = vector.extract_strided_slice %447 {offsets = [0, 96], sizes = [8, 32], strides = [1, 1]} : vector<8x128xf32> to vector<8x32xf32>
    %451 = vector.extract_strided_slice %442 {offsets = [0, 64], sizes = [8, 32], strides = [1, 1]} : vector<8x128xf32> to vector<8x32xf32>
    %452 = math.tanh %451 : vector<8x32xf32>
    %453 = arith.mulf %449, %385 : vector<8x32xf32>
    %454 = arith.mulf %448, %452 : vector<8x32xf32>
    %455 = arith.addf %453, %454 : vector<8x32xf32>
    %456 = math.tanh %455 : vector<8x32xf32>
    %457 = arith.mulf %450, %456 : vector<8x32xf32>
    %c7 = arith.constant 7 : index
    %c0_156 = arith.constant 0 : index
    %c0_157 = arith.constant 0 : index
    %458 = vector.load %arg1[%c7, %c0_156, %c0_157] : memref<8x8x16xf32, #tpu.memory_space<vmem>>, vector<1x8x16xf32>
    %459 = vector.shape_cast %458 : vector<1x8x16xf32> to vector<8x16xf32>
    %cst_158 = arith.constant dense<0.000000e+00> : vector<8x16xf32>
    %460 = tpu.matmul %457, %1, %cst_158 {dimension_numbers = #tpu.dot_dimension_numbers<[1], [0], [0], [1], [0, 0, 1, 1], [], []>} : vector<8x32xf32>, vector<32x16xf32>, vector<8x16xf32> -> vector<8x16xf32>
    %461 = arith.negf %460 : vector<8x16xf32>
    %462 = math.exp %461 : vector<8x16xf32>
    %cst_159 = arith.constant 1.000000e+00 : f32
    %463 = vector.broadcast %cst_159 : f32 to vector<8x16xf32>
    %464 = arith.addf %463, %462 : vector<8x16xf32>
    %465 = arith.divf %463, %464 : vector<8x16xf32>
    %cst_160 = arith.constant 2.000000e+00 : f32
    %466 = vector.broadcast %cst_160 : f32 to vector<8x16xf32>
    %467 = arith.mulf %466, %465 : vector<8x16xf32>
    %468 = arith.mulf %467, %459 : vector<8x16xf32>
    %cst_161 = arith.constant dense<0.000000e+00> : vector<8x32xf32>
    %469 = tpu.matmul %468, %2, %cst_161 {dimension_numbers = #tpu.dot_dimension_numbers<[1], [0], [0], [1], [0, 0, 1, 1], [], []>} : vector<8x16xf32>, vector<16x32xf32>, vector<8x32xf32> -> vector<8x32xf32>
    %470 = arith.negf %469 : vector<8x32xf32>
    %471 = math.exp %470 : vector<8x32xf32>
    %cst_162 = arith.constant 1.000000e+00 : f32
    %472 = vector.broadcast %cst_162 : f32 to vector<8x32xf32>
    %473 = arith.addf %472, %471 : vector<8x32xf32>
    %474 = arith.divf %472, %473 : vector<8x32xf32>
    %cst_163 = arith.constant 2.000000e+00 : f32
    %475 = vector.broadcast %cst_163 : f32 to vector<8x32xf32>
    %476 = arith.mulf %475, %474 : vector<8x32xf32>
    %477 = arith.mulf %476, %457 : vector<8x32xf32>
    %cst_164 = arith.constant dense<0.000000e+00> : vector<8x16xf32>
    %478 = tpu.matmul %477, %1, %cst_164 {dimension_numbers = #tpu.dot_dimension_numbers<[1], [0], [0], [1], [0, 0, 1, 1], [], []>} : vector<8x32xf32>, vector<32x16xf32>, vector<8x16xf32> -> vector<8x16xf32>
    %479 = arith.negf %478 : vector<8x16xf32>
    %480 = math.exp %479 : vector<8x16xf32>
    %cst_165 = arith.constant 1.000000e+00 : f32
    %481 = vector.broadcast %cst_165 : f32 to vector<8x16xf32>
    %482 = arith.addf %481, %480 : vector<8x16xf32>
    %483 = arith.divf %481, %482 : vector<8x16xf32>
    %cst_166 = arith.constant 2.000000e+00 : f32
    %484 = vector.broadcast %cst_166 : f32 to vector<8x16xf32>
    %485 = arith.mulf %484, %483 : vector<8x16xf32>
    %486 = arith.mulf %485, %468 : vector<8x16xf32>
    %cst_167 = arith.constant dense<0.000000e+00> : vector<8x32xf32>
    %487 = tpu.matmul %486, %2, %cst_167 {dimension_numbers = #tpu.dot_dimension_numbers<[1], [0], [0], [1], [0, 0, 1, 1], [], []>} : vector<8x16xf32>, vector<16x32xf32>, vector<8x32xf32> -> vector<8x32xf32>
    %488 = arith.negf %487 : vector<8x32xf32>
    %489 = math.exp %488 : vector<8x32xf32>
    %cst_168 = arith.constant 1.000000e+00 : f32
    %490 = vector.broadcast %cst_168 : f32 to vector<8x32xf32>
    %491 = arith.addf %490, %489 : vector<8x32xf32>
    %492 = arith.divf %490, %491 : vector<8x32xf32>
    %cst_169 = arith.constant 2.000000e+00 : f32
    %493 = vector.broadcast %cst_169 : f32 to vector<8x32xf32>
    %494 = arith.mulf %493, %492 : vector<8x32xf32>
    %495 = arith.mulf %494, %477 : vector<8x32xf32>
    %cst_170 = arith.constant dense<0.000000e+00> : vector<8x16xf32>
    %496 = tpu.matmul %495, %1, %cst_170 {dimension_numbers = #tpu.dot_dimension_numbers<[1], [0], [0], [1], [0, 0, 1, 1], [], []>} : vector<8x32xf32>, vector<32x16xf32>, vector<8x16xf32> -> vector<8x16xf32>
    %497 = arith.negf %496 : vector<8x16xf32>
    %498 = math.exp %497 : vector<8x16xf32>
    %cst_171 = arith.constant 1.000000e+00 : f32
    %499 = vector.broadcast %cst_171 : f32 to vector<8x16xf32>
    %500 = arith.addf %499, %498 : vector<8x16xf32>
    %501 = arith.divf %499, %500 : vector<8x16xf32>
    %cst_172 = arith.constant 2.000000e+00 : f32
    %502 = vector.broadcast %cst_172 : f32 to vector<8x16xf32>
    %503 = arith.mulf %502, %501 : vector<8x16xf32>
    %504 = arith.mulf %503, %486 : vector<8x16xf32>
    %cst_173 = arith.constant dense<0.000000e+00> : vector<8x32xf32>
    %505 = tpu.matmul %504, %3, %cst_173 {dimension_numbers = #tpu.dot_dimension_numbers<[1], [0], [0], [1], [0, 0, 1, 1], [], []>} : vector<8x16xf32>, vector<16x32xf32>, vector<8x32xf32> -> vector<8x32xf32>
    %cst_174 = arith.constant dense<0.000000e+00> : vector<8x32xf32>
    %506 = tpu.matmul %495, %4, %cst_174 {dimension_numbers = #tpu.dot_dimension_numbers<[1], [0], [0], [1], [0, 0, 1, 1], [], []>} : vector<8x32xf32>, vector<32x32xf32>, vector<8x32xf32> -> vector<8x32xf32>
    %507 = arith.addf %505, %506 : vector<8x32xf32>
    %508 = arith.addf %507, %9 : vector<8x32xf32>
    %cst_175 = arith.constant dense<0.000000e+00> : vector<8x128xf32>
    %509 = tpu.matmul %504, %5, %cst_175 {dimension_numbers = #tpu.dot_dimension_numbers<[1], [0], [0], [1], [0, 0, 1, 1], [], []>} : vector<8x16xf32>, vector<16x128xf32>, vector<8x128xf32> -> vector<8x128xf32>
    %cst_176 = arith.constant dense<0.000000e+00> : vector<8x128xf32>
    %510 = tpu.matmul %508, %6, %cst_176 {dimension_numbers = #tpu.dot_dimension_numbers<[1], [0], [0], [1], [0, 0, 1, 1], [], []>} : vector<8x32xf32>, vector<32x128xf32>, vector<8x128xf32> -> vector<8x128xf32>
    %511 = arith.addf %509, %510 : vector<8x128xf32>
    %512 = arith.addf %511, %12 : vector<8x128xf32>
    %513 = arith.negf %512 : vector<8x128xf32>
    %514 = math.exp %513 : vector<8x128xf32>
    %cst_177 = arith.constant 1.000000e+00 : f32
    %515 = vector.broadcast %cst_177 : f32 to vector<8x128xf32>
    %516 = arith.addf %515, %514 : vector<8x128xf32>
    %517 = arith.divf %515, %516 : vector<8x128xf32>
    %518 = vector.extract_strided_slice %517 {offsets = [0, 0], sizes = [8, 32], strides = [1, 1]} : vector<8x128xf32> to vector<8x32xf32>
    %519 = vector.extract_strided_slice %517 {offsets = [0, 32], sizes = [8, 32], strides = [1, 1]} : vector<8x128xf32> to vector<8x32xf32>
    %520 = vector.extract_strided_slice %517 {offsets = [0, 96], sizes = [8, 32], strides = [1, 1]} : vector<8x128xf32> to vector<8x32xf32>
    %521 = vector.extract_strided_slice %512 {offsets = [0, 64], sizes = [8, 32], strides = [1, 1]} : vector<8x128xf32> to vector<8x32xf32>
    %522 = math.tanh %521 : vector<8x32xf32>
    %523 = arith.mulf %519, %455 : vector<8x32xf32>
    %524 = arith.mulf %518, %522 : vector<8x32xf32>
    %525 = arith.addf %523, %524 : vector<8x32xf32>
    %526 = math.tanh %525 : vector<8x32xf32>
    %527 = arith.mulf %520, %526 : vector<8x32xf32>
    %528 = tpu.concatenate %317, %387, %457, %527 in 1 : vector<8x32xf32>, vector<8x32xf32>, vector<8x32xf32>, vector<8x32xf32> -> vector<8x128xf32>
    %c0_178 = arith.constant 0 : index
    %c128 = arith.constant 128 : index
    %529 = vector.load %arg10[%c0_178, %c128] : memref<8x256xf32, #tpu.memory_space<vmem>>, vector<8x128xf32>
    tpu.vector_store %arg10[%c0_178, %c128], %528 {strides = array<i32>} : memref<8x256xf32, #tpu.memory_space<vmem>>, vector<8x128xf32>,
    return
  }
  func.func @transform_0(%arg0: i32) -> (i32, i32, i32) {
    %c0_i32 = arith.constant 0 : i32
    %c0_i32_0 = arith.constant 0 : i32
    %c0_i32_1 = arith.constant 0 : i32
    return %c0_i32, %arg0, %c0_i32_0 : i32, i32, i32
  }
  func.func @transform_1(%arg0: i32) -> (i32, i32) {
    %c0_i32 = arith.constant 0 : i32
    %c0_i32_0 = arith.constant 0 : i32
    %c0_i32_1 = arith.constant 0 : i32
    return %c0_i32, %c0_i32_0 : i32, i32
  }
  func.func @transform_2(%arg0: i32) -> (i32, i32) {
    %c0_i32 = arith.constant 0 : i32
    %c0_i32_0 = arith.constant 0 : i32
    %c0_i32_1 = arith.constant 0 : i32
    return %c0_i32, %c0_i32_0 : i32, i32
  }
  func.func @transform_3(%arg0: i32) -> (i32, i32) {
    %c0_i32 = arith.constant 0 : i32
    %c0_i32_0 = arith.constant 0 : i32
    %c0_i32_1 = arith.constant 0 : i32
    return %c0_i32, %c0_i32_0 : i32, i32
  }
  func.func @transform_4(%arg0: i32) -> (i32, i32) {
    %c0_i32 = arith.constant 0 : i32
    %c0_i32_0 = arith.constant 0 : i32
    %c0_i32_1 = arith.constant 0 : i32
    return %c0_i32, %c0_i32_0 : i32, i32
  }
  func.func @transform_5(%arg0: i32) -> (i32, i32) {
    %c0_i32 = arith.constant 0 : i32
    %c0_i32_0 = arith.constant 0 : i32
    %c0_i32_1 = arith.constant 0 : i32
    return %c0_i32, %c0_i32_0 : i32, i32
  }
  func.func @transform_6(%arg0: i32) -> (i32, i32) {
    %c0_i32 = arith.constant 0 : i32
    %c0_i32_0 = arith.constant 0 : i32
    %c0_i32_1 = arith.constant 0 : i32
    return %c0_i32, %c0_i32_0 : i32, i32
  }
  func.func @transform_7(%arg0: i32) -> (i32, i32) {
    %c0_i32 = arith.constant 0 : i32
    %c0_i32_0 = arith.constant 0 : i32
    %c0_i32_1 = arith.constant 0 : i32
    return %c0_i32, %c0_i32_0 : i32, i32
  }
  func.func @transform_8(%arg0: i32) -> (i32, i32) {
    %c0_i32 = arith.constant 0 : i32
    %c0_i32_0 = arith.constant 0 : i32
    %c0_i32_1 = arith.constant 0 : i32
    return %c0_i32, %c0_i32_0 : i32, i32
  }
  func.func @transform_9(%arg0: i32) -> (i32, i32) {
    %c0_i32 = arith.constant 0 : i32
    %c0_i32_0 = arith.constant 0 : i32
    return %arg0, %c0_i32 : i32, i32
  }
}

</mosaic_0001>

<bundles_post_ra>
// kernel: tpu_custom_call.1
= control target key start
LH: loop header
LB: loop body
LE: loop exit
PB: predicated region body
PF: predicated region fallthrough
CT: control target
= control target key end

     0   :  { %14 = vsyncpa [#allocation3], 0  ;;  %s7821_s0 = inlined_call_operand.hbm [shape: f32[8,8,16], index: 0, kind: input, shape index: {}]   ;;  %s7822_s1 = inlined_call_operand.vmem [shape: f32[32,16], index: 1, kind: input, shape index: {}]   ;;  %s7823_s2 = inlined_call_operand.hbm [shape: f32[16,32], index: 2, kind: input, shape index: {}]   ;;  %s7824_s3 = inlined_call_operand.hbm [shape: f32[16,32], index: 3, kind: input, shape index: {}]   ;;  %s7825_s4 = inlined_call_operand.vmem [shape: f32[32,32], index: 4, kind: input, shape index: {}]   ;;  %s7826_s5 = inlined_call_operand.hbm [shape: f32[16,128], index: 5, kind: input, shape index: {}]   ;;  %s7827_s6 = inlined_call_operand.vmem [shape: f32[32,128], index: 6, kind: input, shape index: {}]   ;;  %s7828_s7 = inlined_call_operand.vmem [shape: f32[1,32], index: 7, kind: input, shape index: {}]   ;;  %s7829_s8 = inlined_call_operand.vmem [shape: f32[1,128], index: 8, kind: input, shape index: {}]   ;;  %s7830_s9 = inlined_call_operand.hbm [shape: f32[8,256], index: 9, kind: output, shape index: {}]  }
   0x1   :  { %15 = vsyncpa [#allocation6], 0 }
   0x2   :  { %16 = vsyncpa [#allocation9], 0 }
   0x3   :  { %17 = vsyncpa [#allocation4], 0  ;;  %s7087_s30 = smov [#allocation5]   ;;  %s7088_s11 = smov [#allocation2]  }
   0x4   :  { %s37_s10 = sshll.u32 %s7087_s30, 4  ;;  %s23_s12 = sshll.u32 %s7088_s11, 4  ;;  %s38_s10 = int_to_ptr.vmem [resolvable:$true] %s37_s10  ;;  %s7150_s12 = int_to_ptr.vmem [resolvable:$true] %s23_s12 }
   0x5   :  { %s6969_s15 = scalar_lea.hbm %s7823_s2, 256 }
   0x6   :  { %p6970_p0 = scmp.ne.s32.totalorder %s7823_s2, %s6969_s15  ;;  %p6973_p1 = scmp.lt.u32.totalorder %s6969_s15, %s7823_s2 }
   0x8   :  { %p6975_p2 = pnand %p6973_p1, %p6970_p0 }
   0xa   :  { %6978 = shalt.err (!%p6975_p2)
}
   0xb   :  { %s6979_s20 = scalar_lea.vmem %s38_s10, 256  ;;  %p6984_p4 = scmp.lt.s32.totalorder %s38_s10, %s38_s10 }
   0xc   :  { %p6980_p3 = scmp.ne.s32.totalorder %s38_s10, %s6979_s20  ;;  %p6985_p5 = scmp.lt.s32.totalorder %s6979_s20, %s6979_s20 }
   0xe   :  { %p6986_p6 = por %p6985_p5, %p6984_p4 }
  0x10   :  { %p6987_p7 = pnand %p6986_p6, %p6980_p3 }
  0x12   :  { %6990 = shalt.err (!%p6987_p7)
}
  0x13   :  { %s7089_s21 = smov 128   ;;  %s7090_s22 = smov 8  }
  0x14   :  { %43 = dma.hbm_to_vmem [thread:$0]  %s7823_s2, 256, %s38_s10, [#allocation6], %s7089_s21, %s7089_s21, %s7090_s22  }
  0x15   :  { %s6991_s27 = scalar_lea.hbm %s7821_s0, 1024 }
  0x16   :  { %p6992_p8 = scmp.ne.s32.totalorder %s7821_s0, %s6991_s27  ;;  %p6995_p9 = scmp.lt.u32.totalorder %s6991_s27, %s7821_s0 }
  0x18   :  { %p6997_p10 = pnand %p6995_p9, %p6992_p8 }
  0x1a   :  { %7000 = shalt.err (!%p6997_p10)
}
  0x1b   :  { %s7001_s13 = scalar_lea.vmem %s7150_s12, 1024  ;;  %p7006_p12 = scmp.lt.s32.totalorder %s7150_s12, %s7150_s12 }
  0x1c   :  { %p7002_p11 = scmp.ne.s32.totalorder %s7150_s12, %s7001_s13  ;;  %p7007_p13 = scmp.lt.s32.totalorder %s7001_s13, %s7001_s13 }
  0x1e   :  { %p7008_p0 = por %p7007_p13, %p7006_p12 }
  0x20   :  { %p7009_p1 = pnand %p7008_p0, %p7002_p11 }
  0x22   :  { %7012 = shalt.err (!%p7009_p1)
}
  0x23   :  { %29 = dma.hbm_to_vmem [thread:$0]  %s7821_s0, 1024, %s7150_s12, [#allocation3], %s7089_s21, %s7089_s21, %s7090_s22  }
  0x24   :  { %s7091_s14 = smov [#allocation7]   ;;  %s7092_s16 = smov [#allocation8]  }
  0x25   :  { %s49_s15 = sshll.u32 %s7091_s14, 4  ;;  %s63_s17 = sshll.u32 %s7092_s16, 4  ;;  %s50_s15 = int_to_ptr.vmem [resolvable:$true] %s49_s15  ;;  %s7187_s17 = int_to_ptr.vmem [resolvable:$true] %s63_s17 }
  0x26   :  { %s7013_s20 = scalar_lea.hbm %s7824_s3, 256 }
  0x27   :  { %p7014_p2 = scmp.ne.s32.totalorder %s7824_s3, %s7013_s20  ;;  %p7017_p3 = scmp.lt.u32.totalorder %s7013_s20, %s7824_s3 }
  0x29   :  { %p7019_p4 = pnand %p7017_p3, %p7014_p2 }
  0x2b   :  { %7022 = shalt.err (!%p7019_p4)
}
  0x2c   :  { %s7023_s0 = scalar_lea.vmem %s50_s15, 256  ;;  %p7028_p6 = scmp.lt.s32.totalorder %s50_s15, %s50_s15 }
  0x2d   :  { %p7024_p5 = scmp.ne.s32.totalorder %s50_s15, %s7023_s0  ;;  %p7029_p7 = scmp.lt.s32.totalorder %s7023_s0, %s7023_s0 }
  0x2f   :  { %p7030_p8 = por %p7029_p7, %p7028_p6 }
  0x31   :  { %p7031_p9 = pnand %p7030_p8, %p7024_p5 }
  0x33   :  { %7034 = shalt.err (!%p7031_p9)
}
  0x34   :  { %55 = dma.hbm_to_vmem [thread:$0]  %s7824_s3, 256, %s50_s15, [#allocation6], %s7089_s21, %s7089_s21, %s7090_s22  }
  0x35   :  { %s7035_s30 = scalar_lea.hbm %s7826_s5, 256 }
  0x36   :  { %p7036_p10 = scmp.ne.s32.totalorder %s7826_s5, %s7035_s30  ;;  %p7039_p11 = scmp.lt.u32.totalorder %s7035_s30, %s7826_s5 }
  0x38   :  { %p7041_p12 = pnand %p7039_p11, %p7036_p10 }
  0x3a   :  { %7044 = shalt.err (!%p7041_p12)
}
  0x3b   :  { %s7045_s14 = scalar_lea.vmem %s7187_s17, 256  ;;  %p7050_p0 = scmp.lt.s32.totalorder %s7187_s17, %s7187_s17 }
  0x3c   :  { %p7046_p13 = scmp.ne.s32.totalorder %s7187_s17, %s7045_s14  ;;  %p7051_p1 = scmp.lt.s32.totalorder %s7045_s14, %s7045_s14 }
  0x3e   :  { %p7052_p2 = por %p7051_p1, %p7050_p0 }
  0x40   :  { %p7053_p3 = pnand %p7052_p2, %p7046_p13 }
  0x42   :  { %7056 = shalt.err (!%p7053_p3)
}
  0x43   :  { %69 = dma.hbm_to_vmem [thread:$0]  %s7826_s5, 256, %s7187_s17, [#allocation9], %s7089_s21, %s7089_s21, %s7090_s22  }
  0x44   :  { %7079 = dma.done.wait [#allocation3], 1024  }
  0x45   :  { %7080 = vsyncadd [#allocation3], 4294966272 }
  0x46   :  { %7081 = dma.done.wait [#allocation6], 512  }
  0x47   :  { %7082 = vsyncadd [#allocation6], 4294966784 }
  0x48   :  { %7083 = dma.done.wait [#allocation9], 256  }
  0x49   :  { %7084 = vsyncadd [#allocation9], 4294967040  ;;  %v7093_v0 = vmov 0.0|0.0   ;;  %vm7094_vm0 = vmmov 0   ;;  %v7095_v1 = vmov 0.0   ;;  %v94_v2 = vld [vmem:[#allocation7] sm:$0xff] }
  0x4a   :  { %6444 = vmatprep.subr.bf16.mxu0 %v7093_v0  ;;  %5842 = vmatprep.mubr.msk.f32.mxu0 %vm7094_vm0, %v7095_v1  ;;  %v95_v3 = vld [vmem:[#allocation7 + $0x8] sm:$0xff]  ;;  %v102_v5 = vld [vmem:[%s7827_s6] sm:$0xff]  ;;  %v103_v6 = vld [vmem:[%s7827_s6 + $0x8] sm:$0xff]  ;;  %vm121_vm1 = vcmask 130048   ;;  %vm195_vm2 = vcmask 261120   ;;  %s7096_s26 = smov 64  }
  0x4b   :  { %6447 = vmatprep.subr.bf16.mxu1 %v7093_v0  ;;  %5853 = vmatprep.mubr.msk.f32.mxu1 %vm7094_vm0, %v7095_v1  ;;  %v7230_v4 = vpack.c.bf16 %v95_v3, %v94_v2  ;;  %v100_v7 = vld [vmem:[#allocation8] sm:$0xff]  ;;  %v7238_v8 = vpack.c.bf16 %v103_v6, %v102_v5  ;;  %v101_v9 = vld [vmem:[#allocation8 + $0x8] sm:$0xff]  ;;  %v104_v12 = vld [vmem:[%s7827_s6 + $0x10] sm:$0xff]  ;;  %s7097_s0 = smov 32   ;;  %vm2537_vm3 = vcmask 523264   ;;  %vm2539_vm4 = vcmask 785408  }
  0x4c   :  { %v120_v10 = vld [vmem:[#allocation2] sm:$0xff]  ;;  %v7241_v11 = vpack.c.bf16 %v101_v9, %v100_v7  ;;  %v105_v13 = vld [vmem:[%s7827_s6 + $0x18] sm:$0xff]  ;;  %v89_v37 = vld [vmem:[%s7822_s1 + $0x8] sm:$0xff] }
  0x4d   :  { %6446 = vmatpush3.bf16.msra.mxu0 %v7230_v4  ;;  %6449 = vmatpush3.bf16.msra.mxu1 %v7238_v8  ;;  %v7260_v14 = vpack.c.bf16 %v105_v13, %v104_v12  ;;  %v7267_v15 = vld [vmem:[%s7828_s7] ss:$0 sm:$0xff]  ;;  %v90_v38 = vld [vmem:[%s7822_s1 + $0x10] sm:$0xff]  ;;  %v91_v40 = vld [vmem:[%s7822_s1 + $0x18] sm:$0xff] }
  0x4e   :  { %6453 = vmatprep.subr.bf16.mxu0 %v7093_v0  ;;  %6450 = vmatprep.subr.bf16.mxu1 %v7093_v0  ;;  %v7276_v21 = vld [vmem:[%s7829_s8] ss:$0 sm:$0xff]  ;;  %v7299_v41 = vpack.c.bf16 %v91_v40, %v90_v38  ;;  %v93_v47 = vld [vmem:[#allocation5 + $0x8] sm:$0xff] }
  0x4f   :  { %v88_v36 = vld [vmem:[%s7822_s1] sm:$0xff]  ;;  %v365_v55 = vld [vmem:[#allocation2 + $0x8] sm:$0xff] }
  0x50   :  { %5843 = vmatmul.mubr.msk.f32.vlgmr.msra.gmra.mrb[0].mxu0 %vm121_vm1, %v120_v10  ;;  %v7293_v39 = vpack.c.bf16 %v89_v37, %v88_v36  ;;  %v92_v46 = vld [vmem:[#allocation5] sm:$0xff] }
  0x51   :  { %6455 = vmatpush3.bf16.msra.mxu0 %v7241_v11  ;;  %5860 = vmatprep.mubr.msk.f32.mxu0 %vm7094_vm0, %v7095_v1  ;;  %v7312_v48 = vpack.c.bf16 %v93_v47, %v92_v46 }
  0x52   :  { %6456 = vmatprep.subr.bf16.mxu0 %v7093_v0  ;;  %6452 = vmatpush3.bf16.msra.mxu1 %v7260_v14 }
  0x53   :  { %6462 = vmatprep.subr.bf16.mxu1 %v7093_v0 }
  0x54   :  { %5861 = vmatmul.mubr.msk.f32.vlgmr.msra.gmra.mrb[2].mxu0 %vm121_vm1, %v120_v10 }
  0x55   :  { %5871 = vmatprep.mubr.msk.f32.mxu0 %vm7094_vm0, %v7095_v1  ;;  %6458 = vmatpush3.bf16.msra.mxu0 %v7293_v39 }
  0x56   :  { %6459 = vmatprep.subr.bf16.mxu0 %v7093_v0 }
  0x59   :  { %6461 = vmatpush3.bf16.msra.mxu0 %v7299_v41 }
  0x5a   :  { %6471 = vmatprep.subr.bf16.mxu0 %v7093_v0 }
 0x123   :  { %v191_v16 = vpop.f32.mrb[0].mxu0 }
 0x124   :  { %v192_v17 = vadd.f32 %v7267_v15, %v191_v16  ;;  %v5844_v18 = vpop.f32.mrb[1].mxu0 }
 0x125   :  { %v97_v18 = vld [vmem:[%s7825_s4 + $0x8] sm:$0xff] }
 0x126   :  { %5854 = vmatmul.mubr.msk.f32.vlgmr.msra.gmra.mrb[0].mxu1 %vm195_vm2, %v192_v17  ;;  %v96_v17 = vld [vmem:[%s7825_s4] sm:$0xff] }
 0x127   :  { %v335_v19 = vpop.f32.mrb[2].mxu0  ;;  %5878 = vmatprep.mubr.msk.f32.mxu1 %vm7094_vm0, %v7095_v1  ;;  %6464 = vmatpush3.bf16.msra.mxu1 %v7312_v48 }
 0x128   :  { %v5862_v20 = vpop.f32.mrb[3].mxu0  ;;  %6465 = vmatprep.subr.bf16.mxu1 %v7093_v0 }
 0x129   :  { %v98_v20 = vld [vmem:[%s7825_s4 + $0x10] sm:$0xff] }
 0x1f9   :  { %v265_v22 = vpop.f32.mrb[0].mxu1 }
 0x1fa   :  { %v336_v23 = vadd.f32 %v335_v19, %v265_v22  ;;  %v5855_v24 = vpop.f32.mrb[1].mxu1  ;;  %v7342_v19 = vpack.c.bf16 %v97_v18, %v96_v17  ;;  %v99_v22 = vld [vmem:[%s7825_s4 + $0x18] sm:$0xff] }
 0x1fc   :  { %v339_v25 = vadd.f32 %v7276_v21, %v336_v23  ;;  %v7352_v23 = vpack.c.bf16 %v99_v22, %v98_v20  ;;  %v1087_v20 = vld [vmem:[#allocation2 + $0x10] sm:$0xff] }
 0x1fe   :  { %6763 = vtanh.f32 %v339_v25  ;;  %v5462_v27 = vmul.f32 -1.442695, %v339_v25 }
 0x200   :  { %6765 = vpow2.f32 %v5462_v27 }
 0x208   :  { %v6764_v26 = vpop.eup %6763 }
 0x209   :  { %349 = vrot.lane.b32.xlu0 %v6764_v26, %s7096_s26 }
 0x20a   :  { %v6766_v28 = vpop.eup %6765 }
 0x20b   :  { %v343_v29 = vadd.f32 1.0, %v6766_v28 }
 0x20d   :  { %6767 = vrcp.f32 %v343_v29 }
 0x217   :  { %v6768_v30 = vpop.eup %6767 }
 0x218   :  { %v347_v33 = vmul.f32 0.0, %v6768_v30 }
 0x27b   :  { %v350_v31 = vpop.permute.xlu0 %349 }
 0x27c   :  { %v352_v32 = vmul.f32 %v6768_v30, %v350_v31 }
 0x27e   :  { %354 = vrot.lane.b32.xlu0 %v352_v32, %s7097_s0 }
 0x2f0   :  { %v355_v34 = vpop.permute.xlu0 %354 }
 0x2f1   :  { %v7281_v35 = vadd.f32 %v355_v34, %v347_v33 }
 0x2f3   :  { %6769 = vtanh.f32 %v7281_v35 }
 0x2fd   :  { %v6770_v42 = vpop.eup %6769 }
 0x2fe   :  { %360 = vrot.lane.b32.xlu1 %v6770_v42, %s7096_s26 }
 0x370   :  { %v361_v43 = vpop.permute.xlu1 %360 }
 0x371   :  { %v363_v44 = vmul.f32 %v6768_v30, %v361_v43 }
 0x373   :  { %367 = vrot.lane.b32.xlu1 %v363_v44, %s7097_s0 }
 0x3e5   :  { %v7306_v45 = vpop.permute.xlu1 %367 }
 0x3e6   :  { %5872 = vmatmul.mubr.msk.f32.vlgmr.msra.gmra.mrb[4].mxu0 %vm195_vm2, %v7306_v45 }
 0x3e7   :  { %5896 = vmatprep.mubr.msk.f32.mxu0 %vm7094_vm0, %v7095_v1  ;;  %6473 = vmatpush3.bf16.msra.mxu0 %v7312_v48 }
 0x3e8   :  { %6474 = vmatprep.subr.bf16.mxu0 %v7093_v0 }
 0x4b9   :  { %v437_v49 = vpop.f32.mrb[4].mxu0 }
 0x4ba   :  { %v5464_v50 = vmul.f32 -1.442695, %v437_v49  ;;  %v5873_v51 = vpop.f32.mrb[5].mxu0 }
 0x4bc   :  { %6771 = vpow2.f32 %v5464_v50 }
 0x4c6   :  { %v6772_v52 = vpop.eup %6771 }
 0x4c7   :  { %v444_v53 = vadd.f32 1.0, %v6772_v52 }
 0x4c9   :  { %6773 = vrcp.f32 %v444_v53 }
 0x4d3   :  { %v6774_v54 = vpop.eup %6773 }
 0x4d4   :  { %v447_v56 = vmul.f32 2.0, %v6774_v54 }
 0x4d6   :  { %v448_v57 = vmul.f32 %v447_v56, %v365_v55 }
 0x4d8   :  { %5879 = vmatmul.mubr.msk.f32.vlgmr.msra.gmra.mrb[2].mxu1 %vm121_vm1, %v448_v57 }
 0x4d9   :  { %6467 = vmatpush3.bf16.msra.mxu1 %v7293_v39  ;;  %5889 = vmatprep.mubr.msk.f32.mxu1 %vm7094_vm0, %v7095_v1 }
 0x4da   :  { %6468 = vmatprep.subr.bf16.mxu1 %v7093_v0 }
 0x4dd   :  { %6470 = vmatpush3.bf16.msra.mxu1 %v7299_v41 }
 0x4de   :  { %6480 = vmatprep.subr.bf16.mxu1 %v7093_v0 }
 0x5ab   :  { %v518_v58 = vpop.f32.mrb[2].mxu1 }
 0x5ac   :  { %v5466_v59 = vmul.f32 -1.442695, %v518_v58  ;;  %v5880_v60 = vpop.f32.mrb[3].mxu1 }
 0x5ae   :  { %6775 = vpow2.f32 %v5466_v59 }
 0x5b8   :  { %v6776_v61 = vpop.eup %6775 }
 0x5b9   :  { %v525_v62 = vadd.f32 1.0, %v6776_v61 }
 0x5bb   :  { %6777 = vrcp.f32 %v525_v62 }
 0x5c5   :  { %v6778_v63 = vpop.eup %6777 }
 0x5c6   :  { %v528_v2 = vmul.f32 2.0, %v6778_v63 }
 0x5c8   :  { %v530_v3 = vmul.f32 %v528_v2, %v7306_v45 }
 0x5ca   :  { %5890 = vmatmul.mubr.msk.f32.vlgmr.msra.gmra.mrb[4].mxu1 %vm195_vm2, %v530_v3 }
 0x5cb   :  { %5918 = vmatprep.mubr.msk.f32.mxu1 %vm7094_vm0, %v7095_v1  ;;  %6482 = vmatpush3.bf16.msra.mxu1 %v7342_v19 }
 0x5cc   :  { %6483 = vmatprep.subr.bf16.mxu1 %v7093_v0 }
 0x5cf   :  { %6485 = vmatpush3.bf16.msra.mxu1 %v7352_v23 }
 0x5d0   :  { %6489 = vmatprep.subr.bf16.mxu1 %v7093_v0 }
 0x69d   :  { %v600_v5 = vpop.f32.mrb[4].mxu1 }
 0x69e   :  { %v5468_v6 = vmul.f32 -1.442695, %v600_v5  ;;  %v5891_v7 = vpop.f32.mrb[5].mxu1 }
 0x6a0   :  { %6779 = vpow2.f32 %v5468_v6 }
 0x6aa   :  { %v6780_v9 = vpop.eup %6779 }
 0x6ab   :  { %v607_v10 = vadd.f32 1.0, %v6780_v9 }
 0x6ad   :  { %6781 = vrcp.f32 %v607_v10 }
 0x6b7   :  { %v6782_v12 = vpop.eup %6781 }
 0x6b8   :  { %v610_v13 = vmul.f32 2.0, %v6782_v12 }
 0x6ba   :  { %v611_v16 = vmul.f32 %v610_v13, %v448_v57 }
 0x6bc   :  { %5897 = vmatmul.mubr.msk.f32.vlgmr.msra.gmra.mrb[6].mxu0 %vm121_vm1, %v611_v16 }
 0x6bd   :  { %6476 = vmatpush3.bf16.msra.mxu0 %v7293_v39  ;;  %5907 = vmatprep.mubr.msk.f32.mxu0 %vm7094_vm0, %v7095_v1 }
 0x6be   :  { %6477 = vmatprep.subr.bf16.mxu0 %v7093_v0 }
 0x6c1   :  { %6479 = vmatpush3.bf16.msra.mxu0 %v7299_v41 }
 0x6c2   :  { %6486 = vmatprep.subr.bf16.mxu0 %v7093_v0 }
 0x78f   :  { %v681_v24 = vpop.f32.mrb[6].mxu0 }
 0x790   :  { %v5470_v25 = vmul.f32 -1.442695, %v681_v24  ;;  %v5898_v26 = vpop.f32.mrb[7].mxu0 }
 0x792   :  { %6783 = vpow2.f32 %v5470_v25 }
 0x79c   :  { %v6784_v27 = vpop.eup %6783 }
 0x79d   :  { %v688_v28 = vadd.f32 1.0, %v6784_v27 }
 0x79f   :  { %6785 = vrcp.f32 %v688_v28 }
 0x7a9   :  { %v6786_v29 = vpop.eup %6785 }
 0x7aa   :  { %v691_v30 = vmul.f32 2.0, %v6786_v29 }
 0x7ac   :  { %v692_v31 = vmul.f32 %v691_v30, %v530_v3 }
 0x7ae   :  { %5908 = vmatmul.mubr.msk.f32.vlgmr.msra.gmra.mrb[8].mxu0 %vm195_vm2, %v692_v31  ;;  %5919 = vmatmul.mubr.msk.f32.vlgmr.msra.gmra.mrb[6].mxu1 %vm195_vm2, %v692_v31 }
 0x7af   :  { %6488 = vmatpush3.bf16.msra.mxu0 %v7230_v4  ;;  %5925 = vmatprep.mubr.msk.f32.mxu0 %vm7094_vm0, %v7095_v1 }
 0x7b0   :  { %6495 = vmatprep.subr.bf16.mxu0 %v7093_v0  ;;  %6491 = vmatpush3.bf16.msra.mxu1 %v7238_v8 }
 0x7b1   :  { %6492 = vmatprep.subr.bf16.mxu1 %v7093_v0  ;;  %5936 = vmatprep.mubr.msk.f32.mxu1 %vm7094_vm0, %v7095_v1 }
 0x7b4   :  { %6494 = vmatpush3.bf16.msra.mxu1 %v7260_v14 }
 0x7b5   :  { %6504 = vmatprep.subr.bf16.mxu1 %v7093_v0 }
 0x881   :  { %v762_v32 = vpop.f32.mrb[8].mxu0  ;;  %v840_v33 = vpop.f32.mrb[6].mxu1 }
 0x882   :  { %v5472_v34 = vmul.f32 -1.442695, %v762_v32  ;;  %v5909_v36 = vpop.f32.mrb[9].mxu0  ;;  %v5920_v37 = vpop.f32.mrb[7].mxu1 }
 0x884   :  { %6787 = vpow2.f32 %v5472_v34 }
 0x88e   :  { %v6788_v38 = vpop.eup %6787 }
 0x88f   :  { %v769_v40 = vadd.f32 1.0, %v6788_v38 }
 0x891   :  { %6789 = vrcp.f32 %v769_v40 }
 0x89b   :  { %v6790_v42 = vpop.eup %6789 }
 0x89c   :  { %v772_v43 = vmul.f32 2.0, %v6790_v42 }
 0x89e   :  { %v773_v44 = vmul.f32 %v772_v43, %v611_v16 }
 0x8a0   :  { %5926 = vmatmul.mubr.msk.f32.vlgmr.msra.gmra.mrb[10].mxu0 %vm121_vm1, %v773_v44 }
 0x8a1   :  { %6497 = vmatpush3.bf16.msra.mxu0 %v7241_v11  ;;  %5943 = vmatprep.mubr.msk.f32.mxu0 %vm7094_vm0, %v7095_v1 }
 0x8a2   :  { %6498 = vmatprep.subr.bf16.mxu0 %v7093_v0 }
 0x8a4   :  { %5944 = vmatmul.mubr.msk.f32.vlgmr.msra.gmra.mrb[12].mxu0 %vm121_vm1, %v773_v44 }
 0x8a5   :  { %6500 = vmatpush3.bf16.msra.mxu0 %v7293_v39  ;;  %5954 = vmatprep.mubr.msk.f32.mxu0 %vm7094_vm0, %v7095_v1 }
 0x8a6   :  { %6501 = vmatprep.subr.bf16.mxu0 %v7093_v0 }
 0x8a9   :  { %6503 = vmatpush3.bf16.msra.mxu0 %v7299_v41 }
 0x8aa   :  { %6513 = vmatprep.subr.bf16.mxu0 %v7093_v0 }
 0x973   :  { %v913_v46 = vpop.f32.mrb[10].mxu0 }
 0x974   :  { %v914_v47 = vadd.f32 %v913_v46, %v840_v33  ;;  %v5927_v49 = vpop.f32.mrb[11].mxu0 }
 0x976   :  { %v917_v50 = vadd.f32 %v7267_v15, %v914_v47 }
 0x977   :  { %v1057_v51 = vpop.f32.mrb[12].mxu0 }
 0x978   :  { %5937 = vmatmul.mubr.msk.f32.vlgmr.msra.gmra.mrb[8].mxu1 %vm195_vm2, %v917_v50  ;;  %v5945_v52 = vpop.f32.mrb[13].mxu0 }
 0x979   :  { %6506 = vmatpush3.bf16.msra.mxu1 %v7312_v48  ;;  %5961 = vmatprep.mubr.msk.f32.mxu1 %vm7094_vm0, %v7095_v1 }
 0x97a   :  { %6507 = vmatprep.subr.bf16.mxu1 %v7093_v0 }
 0xa4b   :  { %v987_v53 = vpop.f32.mrb[8].mxu1 }
 0xa4c   :  { %v1058_v54 = vadd.f32 %v1057_v51, %v987_v53  ;;  %v5938_v55 = vpop.f32.mrb[9].mxu1 }
 0xa4e   :  { %v1061_v56 = vadd.f32 %v7276_v21, %v1058_v54 }
 0xa50   :  { %6791 = vtanh.f32 %v1061_v56  ;;  %v5477_v58 = vmul.f32 -1.442695, %v1061_v56 }
 0xa52   :  { %6793 = vpow2.f32 %v5477_v58 }
 0xa5a   :  { %v6792_v57 = vpop.eup %6791 }
 0xa5b   :  { %1071 = vrot.lane.b32.xlu0 %v6792_v57, %s7096_s26 }
 0xa5c   :  { %v6794_v59 = vpop.eup %6793 }
 0xa5d   :  { %v1065_v60 = vadd.f32 1.0, %v6794_v59 }
 0xa5f   :  { %6795 = vrcp.f32 %v1065_v60 }
 0xa69   :  { %v6796_v61 = vpop.eup %6795 }
 0xa6a   :  { %v1069_v2 = vmul.f32 %v6796_v61, %v7281_v35 }
 0xacd   :  { %v1072_v62 = vpop.permute.xlu0 %1071 }
 0xace   :  { %v1074_v63 = vmul.f32 %v6796_v61, %v1072_v62 }
 0xad0   :  { %1076 = vrot.lane.b32.xlu1 %v1074_v63, %s7097_s0 }
 0xb42   :  { %v1077_v3 = vpop.permute.xlu1 %1076 }
 0xb43   :  { %v7390_v5 = vadd.f32 %v1077_v3, %v1069_v2 }
 0xb45   :  { %6797 = vtanh.f32 %v7390_v5 }
 0xb4f   :  { %v6798_v6 = vpop.eup %6797 }
 0xb50   :  { %1082 = vrot.lane.b32.xlu0 %v6798_v6, %s7096_s26 }
 0xbc2   :  { %v1083_v7 = vpop.permute.xlu0 %1082 }
 0xbc3   :  { %v7394_v9 = vmul.f32 %v6796_v61, %v1083_v7 }
 0xbc5   :  { %1089 = vrot.lane.b32.xlu1 %v7394_v9, %s7097_s0 }
 0xc37   :  { %v1090_v10 = vpop.permute.xlu1 %1089 }
 0xc38   :  { %5955 = vmatmul.mubr.msk.f32.vlgmr.msra.gmra.mrb[14].mxu0 %vm195_vm2, %v1090_v10 }
 0xc39   :  { %6515 = vmatpush3.bf16.msra.mxu0 %v7312_v48  ;;  %5979 = vmatprep.mubr.msk.f32.mxu0 %vm7094_vm0, %v7095_v1 }
 0xc3a   :  { %6516 = vmatprep.subr.bf16.mxu0 %v7093_v0 }
 0xd0b   :  { %v1159_v35 = vpop.f32.mrb[14].mxu0 }
 0xd0c   :  { %v5479_v12 = vmul.f32 -1.442695, %v1159_v35  ;;  %v5956_v13 = vpop.f32.mrb[15].mxu0 }
 0xd0e   :  { %6799 = vpow2.f32 %v5479_v12 }
 0xd18   :  { %v6800_v16 = vpop.eup %6799 }
 0xd19   :  { %v1166_v17 = vadd.f32 1.0, %v6800_v16 }
 0xd1b   :  { %6801 = vrcp.f32 %v1166_v17 }
 0xd25   :  { %v6802_v18 = vpop.eup %6801 }
 0xd26   :  { %v1169_v22 = vmul.f32 2.0, %v6802_v18 }
 0xd28   :  { %v1170_v24 = vmul.f32 %v1169_v22, %v1087_v20 }
 0xd2a   :  { %5962 = vmatmul.mubr.msk.f32.vlgmr.msra.gmra.mrb[10].mxu1 %vm121_vm1, %v1170_v24 }
 0xd2b   :  { %6509 = vmatpush3.bf16.msra.mxu1 %v7293_v39  ;;  %5972 = vmatprep.mubr.msk.f32.mxu1 %vm7094_vm0, %v7095_v1 }
 0xd2c   :  { %6510 = vmatprep.subr.bf16.mxu1 %v7093_v0 }
 0xd2f   :  { %6512 = vmatpush3.bf16.msra.mxu1 %v7299_v41 }
 0xd30   :  { %6522 = vmatprep.subr.bf16.mxu1 %v7093_v0 }
 0xdfd   :  { %v1240_v25 = vpop.f32.mrb[10].mxu1 }
 0xdfe   :  { %v5481_v26 = vmul.f32 -1.442695, %v1240_v25  ;;  %v5963_v27 = vpop.f32.mrb[11].mxu1 }
 0xe00   :  { %6803 = vpow2.f32 %v5481_v26 }
 0xe0a   :  { %v6804_v28 = vpop.eup %6803 }
 0xe0b   :  { %v1247_v29 = vadd.f32 1.0, %v6804_v28 }
 0xe0d   :  { %6805 = vrcp.f32 %v1247_v29 }
 0xe17   :  { %v6806_v30 = vpop.eup %6805 }
 0xe18   :  { %v1250_v31 = vmul.f32 2.0, %v6806_v30 }
 0xe1a   :  { %v1252_v32 = vmul.f32 %v1250_v31, %v1090_v10 }
 0xe1c   :  { %5973 = vmatmul.mubr.msk.f32.vlgmr.msra.gmra.mrb[12].mxu1 %vm195_vm2, %v1252_v32 }
 0xe1d   :  { %6524 = vmatpush3.bf16.msra.mxu1 %v7342_v19  ;;  %6001 = vmatprep.mubr.msk.f32.mxu1 %vm7094_vm0, %v7095_v1 }
 0xe1e   :  { %6525 = vmatprep.subr.bf16.mxu1 %v7093_v0 }
 0xe21   :  { %6527 = vmatpush3.bf16.msra.mxu1 %v7352_v23 }
 0xe22   :  { %6531 = vmatprep.subr.bf16.mxu1 %v7093_v0 }
 0xeef   :  { %v1322_v33 = vpop.f32.mrb[12].mxu1 }
 0xef0   :  { %v5483_v34 = vmul.f32 -1.442695, %v1322_v33  ;;  %v5974_v36 = vpop.f32.mrb[13].mxu1 }
 0xef2   :  { %6807 = vpow2.f32 %v5483_v34 }
 0xefc   :  { %v6808_v37 = vpop.eup %6807 }
 0xefd   :  { %v1329_v38 = vadd.f32 1.0, %v6808_v37 }
 0xeff   :  { %6809 = vrcp.f32 %v1329_v38 }
 0xf09   :  { %v6810_v40 = vpop.eup %6809 }
 0xf0a   :  { %v1332_v42 = vmul.f32 2.0, %v6810_v40 }
 0xf0c   :  { %v1333_v43 = vmul.f32 %v1332_v42, %v1170_v24 }
 0xf0e   :  { %5980 = vmatmul.mubr.msk.f32.vlgmr.msra.gmra.mrb[16].mxu0 %vm121_vm1, %v1333_v43 }
 0xf0f   :  { %6518 = vmatpush3.bf16.msra.mxu0 %v7293_v39  ;;  %5990 = vmatprep.mubr.msk.f32.mxu0 %vm7094_vm0, %v7095_v1 }
 0xf10   :  { %6519 = vmatprep.subr.bf16.mxu0 %v7093_v0 }
 0xf13   :  { %6521 = vmatpush3.bf16.msra.mxu0 %v7299_v41 }
 0xf14   :  { %6528 = vmatprep.subr.bf16.mxu0 %v7093_v0 }
 0xfe1   :  { %v1403_v44 = vpop.f32.mrb[16].mxu0 }
 0xfe2   :  { %v5485_v46 = vmul.f32 -1.442695, %v1403_v44  ;;  %v5981_v47 = vpop.f32.mrb[17].mxu0 }
 0xfe4   :  { %6811 = vpow2.f32 %v5485_v46 }
 0xfee   :  { %v6812_v49 = vpop.eup %6811 }
 0xfef   :  { %v1410_v50 = vadd.f32 1.0, %v6812_v49 }
 0xff1   :  { %6813 = vrcp.f32 %v1410_v50 }
 0xffb   :  { %v6814_v51 = vpop.eup %6813 }
 0xffc   :  { %v1413_v52 = vmul.f32 2.0, %v6814_v51 }
 0xffe   :  { %v1414_v53 = vmul.f32 %v1413_v52, %v1252_v32 }
0x1000   :  { %5991 = vmatmul.mubr.msk.f32.vlgmr.msra.gmra.mrb[18].mxu0 %vm195_vm2, %v1414_v53  ;;  %6002 = vmatmul.mubr.msk.f32.vlgmr.msra.gmra.mrb[14].mxu1 %vm195_vm2, %v1414_v53 }
0x1001   :  { %6530 = vmatpush3.bf16.msra.mxu0 %v7230_v4  ;;  %6008 = vmatprep.mubr.msk.f32.mxu0 %vm7094_vm0, %v7095_v1 }
0x1002   :  { %6537 = vmatprep.subr.bf16.mxu0 %v7093_v0  ;;  %6533 = vmatpush3.bf16.msra.mxu1 %v7238_v8 }
0x1003   :  { %6534 = vmatprep.subr.bf16.mxu1 %v7093_v0  ;;  %6019 = vmatprep.mubr.msk.f32.mxu1 %vm7094_vm0, %v7095_v1 }
0x1006   :  { %6536 = vmatpush3.bf16.msra.mxu1 %v7260_v14 }
0x1007   :  { %6546 = vmatprep.subr.bf16.mxu1 %v7093_v0 }
0x10d3   :  { %v1484_v54 = vpop.f32.mrb[18].mxu0  ;;  %v1562_v55 = vpop.f32.mrb[14].mxu1 }
0x10d4   :  { %v5487_v56 = vmul.f32 -1.442695, %v1484_v54  ;;  %v5992_v57 = vpop.f32.mrb[19].mxu0  ;;  %v6003_v58 = vpop.f32.mrb[15].mxu1 }
0x10d6   :  { %6815 = vpow2.f32 %v5487_v56 }
0x10e0   :  { %v6816_v59 = vpop.eup %6815 }
0x10e1   :  { %v1491_v60 = vadd.f32 1.0, %v6816_v59 }
0x10e3   :  { %6817 = vrcp.f32 %v1491_v60 }
0x10ed   :  { %v6818_v61 = vpop.eup %6817 }
0x10ee   :  { %v1494_v62 = vmul.f32 2.0, %v6818_v61 }
0x10f0   :  { %v1495_v63 = vmul.f32 %v1494_v62, %v1333_v43  ;;  %v1809_v43 = vld [vmem:[#allocation2 + $0x18] sm:$0xff] }
0x10f2   :  { %6009 = vmatmul.mubr.msk.f32.vlgmr.msra.gmra.mrb[20].mxu0 %vm121_vm1, %v1495_v63 }
0x10f3   :  { %6539 = vmatpush3.bf16.msra.mxu0 %v7241_v11  ;;  %6026 = vmatprep.mubr.msk.f32.mxu0 %vm7094_vm0, %v7095_v1 }
0x10f4   :  { %6540 = vmatprep.subr.bf16.mxu0 %v7093_v0 }
0x10f6   :  { %6027 = vmatmul.mubr.msk.f32.vlgmr.msra.gmra.mrb[22].mxu0 %vm121_vm1, %v1495_v63 }
0x10f7   :  { %6542 = vmatpush3.bf16.msra.mxu0 %v7293_v39  ;;  %6037 = vmatprep.mubr.msk.f32.mxu0 %vm7094_vm0, %v7095_v1 }
0x10f8   :  { %6543 = vmatprep.subr.bf16.mxu0 %v7093_v0 }
0x10fb   :  { %6545 = vmatpush3.bf16.msra.mxu0 %v7299_v41 }
0x10fc   :  { %6555 = vmatprep.subr.bf16.mxu0 %v7093_v0 }
0x11c5   :  { %v1635_v2 = vpop.f32.mrb[20].mxu0 }
0x11c6   :  { %v1636_v3 = vadd.f32 %v1635_v2, %v1562_v55  ;;  %v6010_v6 = vpop.f32.mrb[21].mxu0 }
0x11c8   :  { %v1639_v7 = vadd.f32 %v7267_v15, %v1636_v3 }
0x11c9   :  { %v1779_v10 = vpop.f32.mrb[22].mxu0 }
0x11ca   :  { %6020 = vmatmul.mubr.msk.f32.vlgmr.msra.gmra.mrb[16].mxu1 %vm195_vm2, %v1639_v7  ;;  %v6028_v35 = vpop.f32.mrb[23].mxu0 }
0x11cb   :  { %6548 = vmatpush3.bf16.msra.mxu1 %v7312_v48  ;;  %6044 = vmatprep.mubr.msk.f32.mxu1 %vm7094_vm0, %v7095_v1 }
0x11cc   :  { %6549 = vmatprep.subr.bf16.mxu1 %v7093_v0 }
0x129d   :  { %v1709_v12 = vpop.f32.mrb[16].mxu1 }
0x129e   :  { %v1780_v13 = vadd.f32 %v1779_v10, %v1709_v12  ;;  %v6021_v16 = vpop.f32.mrb[17].mxu1 }
0x12a0   :  { %v1783_v17 = vadd.f32 %v7276_v21, %v1780_v13 }
0x12a2   :  { %6819 = vtanh.f32 %v1783_v17  ;;  %v5492_v20 = vmul.f32 -1.442695, %v1783_v17 }
0x12a4   :  { %6821 = vpow2.f32 %v5492_v20 }
0x12ac   :  { %v6820_v18 = vpop.eup %6819 }
0x12ad   :  { %1793 = vrot.lane.b32.xlu0 %v6820_v18, %s7096_s26 }
0x12ae   :  { %v6822_v22 = vpop.eup %6821 }
0x12af   :  { %v1787_v24 = vadd.f32 1.0, %v6822_v22 }
0x12b1   :  { %6823 = vrcp.f32 %v1787_v24 }
0x12bb   :  { %v6824_v25 = vpop.eup %6823 }
0x12bc   :  { %v1791_v28 = vmul.f32 %v6824_v25, %v7390_v5 }
0x131f   :  { %v1794_v26 = vpop.permute.xlu0 %1793 }
0x1320   :  { %v1796_v27 = vmul.f32 %v6824_v25, %v1794_v26 }
0x1322   :  { %1798 = vrot.lane.b32.xlu1 %v1796_v27, %s7097_s0 }
0x1394   :  { %v1799_v29 = vpop.permute.xlu1 %1798 }
0x1395   :  { %v7458_v30 = vadd.f32 %v1799_v29, %v1791_v28 }
0x1397   :  { %6825 = vtanh.f32 %v7458_v30 }
0x13a1   :  { %v6826_v31 = vpop.eup %6825 }
0x13a2   :  { %1804 = vrot.lane.b32.xlu0 %v6826_v31, %s7096_s26 }
0x1414   :  { %v1805_v32 = vpop.permute.xlu0 %1804 }
0x1415   :  { %v7462_v33 = vmul.f32 %v6824_v25, %v1805_v32 }
0x1417   :  { %1811 = vrot.lane.b32.xlu1 %v7462_v33, %s7097_s0 }
0x1489   :  { %v1812_v34 = vpop.permute.xlu1 %1811 }
0x148a   :  { %6038 = vmatmul.mubr.msk.f32.vlgmr.msra.gmra.mrb[24].mxu0 %vm195_vm2, %v1812_v34 }
0x148b   :  { %6557 = vmatpush3.bf16.msra.mxu0 %v7312_v48  ;;  %6062 = vmatprep.mubr.msk.f32.mxu0 %vm7094_vm0, %v7095_v1 }
0x148c   :  { %6558 = vmatprep.subr.bf16.mxu0 %v7093_v0 }
0x155d   :  { %v1881_v5 = vpop.f32.mrb[24].mxu0 }
0x155e   :  { %v5494_v36 = vmul.f32 -1.442695, %v1881_v5  ;;  %v6039_v37 = vpop.f32.mrb[25].mxu0 }
0x1560   :  { %6827 = vpow2.f32 %v5494_v36 }
0x156a   :  { %v6828_v38 = vpop.eup %6827 }
0x156b   :  { %v1888_v40 = vadd.f32 1.0, %v6828_v38 }
0x156d   :  { %6829 = vrcp.f32 %v1888_v40 }
0x1577   :  { %v6830_v42 = vpop.eup %6829 }
0x1578   :  { %v1891_v44 = vmul.f32 2.0, %v6830_v42 }
0x157a   :  { %v1892_v46 = vmul.f32 %v1891_v44, %v1809_v43 }
0x157c   :  { %6045 = vmatmul.mubr.msk.f32.vlgmr.msra.gmra.mrb[18].mxu1 %vm121_vm1, %v1892_v46 }
0x157d   :  { %6551 = vmatpush3.bf16.msra.mxu1 %v7293_v39  ;;  %6055 = vmatprep.mubr.msk.f32.mxu1 %vm7094_vm0, %v7095_v1 }
0x157e   :  { %6552 = vmatprep.subr.bf16.mxu1 %v7093_v0 }
0x1581   :  { %6554 = vmatpush3.bf16.msra.mxu1 %v7299_v41 }
0x1582   :  { %6564 = vmatprep.subr.bf16.mxu1 %v7093_v0 }
0x164f   :  { %v1962_v47 = vpop.f32.mrb[18].mxu1 }
0x1650   :  { %v5496_v49 = vmul.f32 -1.442695, %v1962_v47  ;;  %v6046_v50 = vpop.f32.mrb[19].mxu1 }
0x1652   :  { %6831 = vpow2.f32 %v5496_v49 }
0x165c   :  { %v6832_v51 = vpop.eup %6831 }
0x165d   :  { %v1969_v52 = vadd.f32 1.0, %v6832_v51 }
0x165f   :  { %6833 = vrcp.f32 %v1969_v52 }
0x1669   :  { %v6834_v53 = vpop.eup %6833 }
0x166a   :  { %v1972_v54 = vmul.f32 2.0, %v6834_v53 }
0x166c   :  { %v1974_v55 = vmul.f32 %v1972_v54, %v1812_v34 }
0x166e   :  { %6056 = vmatmul.mubr.msk.f32.vlgmr.msra.gmra.mrb[20].mxu1 %vm195_vm2, %v1974_v55 }
0x166f   :  { %6566 = vmatpush3.bf16.msra.mxu1 %v7342_v19  ;;  %6084 = vmatprep.mubr.msk.f32.mxu1 %vm7094_vm0, %v7095_v1 }
0x1670   :  { %6567 = vmatprep.subr.bf16.mxu1 %v7093_v0 }
0x1673   :  { %6569 = vmatpush3.bf16.msra.mxu1 %v7352_v23 }
0x1674   :  { %6573 = vmatprep.subr.bf16.mxu1 %v7093_v0 }
0x1741   :  { %v2044_v56 = vpop.f32.mrb[20].mxu1 }
0x1742   :  { %v5498_v57 = vmul.f32 -1.442695, %v2044_v56  ;;  %v6057_v58 = vpop.f32.mrb[21].mxu1 }
0x1744   :  { %6835 = vpow2.f32 %v5498_v57 }
0x174e   :  { %v6836_v59 = vpop.eup %6835 }
0x174f   :  { %v2051_v60 = vadd.f32 1.0, %v6836_v59 }
0x1751   :  { %6837 = vrcp.f32 %v2051_v60 }
0x175b   :  { %v6838_v61 = vpop.eup %6837 }
0x175c   :  { %v2054_v62 = vmul.f32 2.0, %v6838_v61 }
0x175e   :  { %v2055_v63 = vmul.f32 %v2054_v62, %v1892_v46  ;;  %v2543_v62 = vld [vmem:[#allocation2 + $0x20] sm:$0xff] }
0x1760   :  { %6063 = vmatmul.mubr.msk.f32.vlgmr.msra.gmra.mrb[26].mxu0 %vm121_vm1, %v2055_v63 }
0x1761   :  { %6560 = vmatpush3.bf16.msra.mxu0 %v7293_v39  ;;  %6073 = vmatprep.mubr.msk.f32.mxu0 %vm7094_vm0, %v7095_v1 }
0x1762   :  { %6561 = vmatprep.subr.bf16.mxu0 %v7093_v0 }
0x1765   :  { %6563 = vmatpush3.bf16.msra.mxu0 %v7299_v41 }
0x1766   :  { %6570 = vmatprep.subr.bf16.mxu0 %v7093_v0 }
0x1833   :  { %v2125_v2 = vpop.f32.mrb[26].mxu0 }
0x1834   :  { %v5500_v3 = vmul.f32 -1.442695, %v2125_v2  ;;  %v6064_v6 = vpop.f32.mrb[27].mxu0 }
0x1836   :  { %6839 = vpow2.f32 %v5500_v3 }
0x1840   :  { %v6840_v7 = vpop.eup %6839 }
0x1841   :  { %v2132_v10 = vadd.f32 1.0, %v6840_v7 }
0x1843   :  { %6841 = vrcp.f32 %v2132_v10 }
0x184d   :  { %v6842_v35 = vpop.eup %6841 }
0x184e   :  { %v2135_v12 = vmul.f32 2.0, %v6842_v35 }
0x1850   :  { %v2136_v13 = vmul.f32 %v2135_v12, %v1974_v55 }
0x1852   :  { %6074 = vmatmul.mubr.msk.f32.vlgmr.msra.gmra.mrb[28].mxu0 %vm195_vm2, %v2136_v13  ;;  %6085 = vmatmul.mubr.msk.f32.vlgmr.msra.gmra.mrb[22].mxu1 %vm195_vm2, %v2136_v13 }
0x1853   :  { %6572 = vmatpush3.bf16.msra.mxu0 %v7230_v4  ;;  %6091 = vmatprep.mubr.msk.f32.mxu0 %vm7094_vm0, %v7095_v1 }
0x1854   :  { %6579 = vmatprep.subr.bf16.mxu0 %v7093_v0  ;;  %6575 = vmatpush3.bf16.msra.mxu1 %v7238_v8 }
0x1855   :  { %6576 = vmatprep.subr.bf16.mxu1 %v7093_v0  ;;  %6102 = vmatprep.mubr.msk.f32.mxu1 %vm7094_vm0, %v7095_v1 }
0x1858   :  { %6578 = vmatpush3.bf16.msra.mxu1 %v7260_v14 }
0x1859   :  { %6588 = vmatprep.subr.bf16.mxu1 %v7093_v0 }
0x1925   :  { %v2206_v16 = vpop.f32.mrb[28].mxu0  ;;  %v2284_v17 = vpop.f32.mrb[22].mxu1 }
0x1926   :  { %v5502_v18 = vmul.f32 -1.442695, %v2206_v16  ;;  %v6075_v20 = vpop.f32.mrb[29].mxu0  ;;  %v6086_v22 = vpop.f32.mrb[23].mxu1 }
0x1928   :  { %6843 = vpow2.f32 %v5502_v18 }
0x1932   :  { %v6844_v24 = vpop.eup %6843 }
0x1933   :  { %v2213_v25 = vadd.f32 1.0, %v6844_v24 }
0x1935   :  { %6845 = vrcp.f32 %v2213_v25 }
0x193f   :  { %v6846_v26 = vpop.eup %6845 }
0x1940   :  { %v2216_v27 = vmul.f32 2.0, %v6846_v26 }
0x1942   :  { %v2217_v28 = vmul.f32 %v2216_v27, %v2055_v63 }
0x1944   :  { %6092 = vmatmul.mubr.msk.f32.vlgmr.msra.gmra.mrb[30].mxu0 %vm121_vm1, %v2217_v28 }
0x1945   :  { %6581 = vmatpush3.bf16.msra.mxu0 %v7241_v11  ;;  %6109 = vmatprep.mubr.msk.f32.mxu0 %vm7094_vm0, %v7095_v1 }
0x1946   :  { %6582 = vmatprep.subr.bf16.mxu0 %v7093_v0 }
0x1948   :  { %6110 = vmatmul.mubr.msk.f32.vlgmr.msra.gmra.mrb[32].mxu0 %vm121_vm1, %v2217_v28 }
0x1949   :  { %6584 = vmatpush3.bf16.msra.mxu0 %v7293_v39  ;;  %6120 = vmatprep.mubr.msk.f32.mxu0 %vm7094_vm0, %v7095_v1 }
0x194a   :  { %6585 = vmatprep.subr.bf16.mxu0 %v7093_v0 }
0x194d   :  { %6587 = vmatpush3.bf16.msra.mxu0 %v7299_v41 }
0x194e   :  { %6597 = vmatprep.subr.bf16.mxu0 %v7093_v0 }
0x1a17   :  { %v2357_v29 = vpop.f32.mrb[30].mxu0 }
0x1a18   :  { %v2358_v31 = vadd.f32 %v2357_v29, %v2284_v17  ;;  %v6093_v32 = vpop.f32.mrb[31].mxu0 }
0x1a1a   :  { %v2361_v34 = vadd.f32 %v7267_v15, %v2358_v31 }
0x1a1b   :  { %v2501_v5 = vpop.f32.mrb[32].mxu0 }
0x1a1c   :  { %6103 = vmatmul.mubr.msk.f32.vlgmr.msra.gmra.mrb[24].mxu1 %vm195_vm2, %v2361_v34  ;;  %v6111_v36 = vpop.f32.mrb[33].mxu0 }
0x1a1d   :  { %6590 = vmatpush3.bf16.msra.mxu1 %v7312_v48  ;;  %6127 = vmatprep.mubr.msk.f32.mxu1 %vm7094_vm0, %v7095_v1 }
0x1a1e   :  { %6591 = vmatprep.subr.bf16.mxu1 %v7093_v0 }
0x1aef   :  { %v2431_v37 = vpop.f32.mrb[24].mxu1 }
0x1af0   :  { %v2502_v38 = vadd.f32 %v2501_v5, %v2431_v37  ;;  %v6104_v40 = vpop.f32.mrb[25].mxu1 }
0x1af2   :  { %v2505_v42 = vadd.f32 %v7276_v21, %v2502_v38 }
0x1af4   :  { %6847 = vtanh.f32 %v2505_v42  ;;  %v5507_v15 = vmul.f32 -1.442695, %v2505_v42 }
0x1af6   :  { %6849 = vpow2.f32 %v5507_v15 }
0x1afe   :  { %v6848_v43 = vpop.eup %6847 }
0x1aff   :  { %2515 = vrot.lane.b32.xlu0 %v6848_v43, %s7096_s26 }
0x1b00   :  { %v6850_v44 = vpop.eup %6849 }
0x1b01   :  { %v2509_v46 = vadd.f32 1.0, %v6850_v44 }
0x1b03   :  { %6851 = vrcp.f32 %v2509_v46 }
0x1b0d   :  { %v6852_v47 = vpop.eup %6851 }
0x1b0e   :  { %v2513_v51 = vmul.f32 %v6852_v47, %v7458_v30 }
0x1b71   :  { %v2516_v49 = vpop.permute.xlu0 %2515 }
0x1b72   :  { %v2518_v50 = vmul.f32 %v6852_v47, %v2516_v49 }
0x1b74   :  { %2520 = vrot.lane.b32.xlu1 %v2518_v50, %s7097_s0 }
0x1be6   :  { %v2521_v52 = vpop.permute.xlu1 %2520 }
0x1be7   :  { %v7526_v53 = vadd.f32 %v2521_v52, %v2513_v51 }
0x1be9   :  { %6853 = vtanh.f32 %v7526_v53 }
0x1bf3   :  { %v6854_v21 = vpop.eup %6853 }
0x1bf4   :  { %2526 = vrot.lane.b32.xlu0 %v6854_v21, %s7096_s26 }
0x1c66   :  { %v2527_v54 = vpop.permute.xlu0 %2526 }
0x1c67   :  { %v7530_v55 = vmul.f32 %v6852_v47, %v2527_v54  ;;  %v7587_v54 = vld [vmem:[%s7828_s7] ss:$0 sm:$0xff]  ;;  %s7098_s7 = smov 96  }
0x1c69   :  { %2545 = vrot.lane.b32.xlu1 %v7530_v55, %s7097_s0 }
0x1cdb   :  { %v2546_v56 = vpop.permute.xlu1 %2545 }
0x1cdc   :  { %6121 = vmatmul.mubr.msk.f32.vlgmr.msra.gmra.mrb[34].mxu0 %vm195_vm2, %v2546_v56 }
0x1cdd   :  { %6599 = vmatpush3.bf16.msra.mxu0 %v7312_v48  ;;  %6145 = vmatprep.mubr.msk.f32.mxu0 %vm7094_vm0, %v7095_v1 }
0x1cde   :  { %6600 = vmatprep.subr.bf16.mxu0 %v7093_v0 }
0x1daf   :  { %v2615_v30 = vpop.f32.mrb[34].mxu0 }
0x1db0   :  { %v5509_v57 = vmul.f32 -1.442695, %v2615_v30  ;;  %v6122_v58 = vpop.f32.mrb[35].mxu0 }
0x1db2   :  { %6855 = vpow2.f32 %v5509_v57 }
0x1dbc   :  { %v6856_v59 = vpop.eup %6855 }
0x1dbd   :  { %v2622_v60 = vadd.f32 1.0, %v6856_v59 }
0x1dbf   :  { %6857 = vrcp.f32 %v2622_v60 }
0x1dc9   :  { %v6858_v61 = vpop.eup %6857 }
0x1dca   :  { %v2625_v63 = vmul.f32 2.0, %v6858_v61  ;;  %v7598_v61 = vld [vmem:[%s7829_s8] ss:$0 sm:$0xff]  ;;  %s7099_s8 = smov [#allocation10]  }
0x1dcb   :  { %s5446_s19 = sshll.u32 %s7099_s8, 4  ;;  %s5447_s19 = int_to_ptr.vmem [resolvable:$true] %s5446_s19 }
0x1dcc   :  { %v2626_v2 = vmul.f32 %v2625_v63, %v2543_v62  ;;  %s7057_s20 = scalar_lea.vmem %s5447_s19, 256  ;;  %p7062_p5 = scmp.lt.s32.totalorder %s5447_s19, %s5447_s19 }
0x1dcd   :  { %p7058_p4 = scmp.ne.s32.totalorder %s5447_s19, %s7057_s20  ;;  %p7063_p6 = scmp.lt.s32.totalorder %s7057_s20, %s7057_s20 }
0x1dce   :  { %6128 = vmatmul.mubr.msk.f32.vlgmr.msra.gmra.mrb[26].mxu1 %vm121_vm1, %v2626_v2 }
0x1dcf   :  { %6593 = vmatpush3.bf16.msra.mxu1 %v7293_v39  ;;  %6138 = vmatprep.mubr.msk.f32.mxu1 %vm7094_vm0, %v7095_v1  ;;  %p7064_p7 = por %p7063_p6, %p7062_p5 }
0x1dd0   :  { %6594 = vmatprep.subr.bf16.mxu1 %v7093_v0 }
0x1dd1   :  { %p7065_p8 = pnand %p7064_p7, %p7058_p4 }
0x1dd3   :  { %6596 = vmatpush3.bf16.msra.mxu1 %v7299_v41 }
0x1dd4   :  { %6606 = vmatprep.subr.bf16.mxu1 %v7093_v0 }
0x1ea1   :  { %v2696_v3 = vpop.f32.mrb[26].mxu1 }
0x1ea2   :  { %v5511_v6 = vmul.f32 -1.442695, %v2696_v3  ;;  %v6129_v7 = vpop.f32.mrb[27].mxu1 }
0x1ea4   :  { %6859 = vpow2.f32 %v5511_v6 }
0x1eae   :  { %v6860_v10 = vpop.eup %6859 }
0x1eaf   :  { %v2703_v35 = vadd.f32 1.0, %v6860_v10 }
0x1eb1   :  { %6861 = vrcp.f32 %v2703_v35 }
0x1ebb   :  { %v6862_v12 = vpop.eup %6861 }
0x1ebc   :  { %v2706_v13 = vmul.f32 2.0, %v6862_v12 }
0x1ebe   :  { %v2708_v16 = vmul.f32 %v2706_v13, %v2546_v56 }
0x1ec0   :  { %6139 = vmatmul.mubr.msk.f32.vlgmr.msra.gmra.mrb[28].mxu1 %vm195_vm2, %v2708_v16 }
0x1ec1   :  { %6608 = vmatpush3.bf16.msra.mxu1 %v7342_v19  ;;  %6167 = vmatprep.mubr.msk.f32.mxu1 %vm7094_vm0, %v7095_v1 }
0x1ec2   :  { %6609 = vmatprep.subr.bf16.mxu1 %v7093_v0 }
0x1ec5   :  { %6611 = vmatpush3.bf16.msra.mxu1 %v7352_v23 }
0x1ec6   :  { %6615 = vmatprep.subr.bf16.mxu1 %v7093_v0 }
0x1f93   :  { %v2778_v17 = vpop.f32.mrb[28].mxu1 }
0x1f94   :  { %v5513_v18 = vmul.f32 -1.442695, %v2778_v17  ;;  %v6140_v20 = vpop.f32.mrb[29].mxu1 }
0x1f96   :  { %6863 = vpow2.f32 %v5513_v18 }
0x1fa0   :  { %v6864_v22 = vpop.eup %6863 }
0x1fa1   :  { %v2785_v24 = vadd.f32 1.0, %v6864_v22 }
0x1fa3   :  { %6865 = vrcp.f32 %v2785_v24 }
0x1fad   :  { %v6866_v25 = vpop.eup %6865 }
0x1fae   :  { %v2788_v26 = vmul.f32 2.0, %v6866_v25 }
0x1fb0   :  { %v2789_v27 = vmul.f32 %v2788_v26, %v2626_v2 }
0x1fb2   :  { %6146 = vmatmul.mubr.msk.f32.vlgmr.msra.gmra.mrb[36].mxu0 %vm121_vm1, %v2789_v27 }
0x1fb3   :  { %6602 = vmatpush3.bf16.msra.mxu0 %v7293_v39  ;;  %6156 = vmatprep.mubr.msk.f32.mxu0 %vm7094_vm0, %v7095_v1 }
0x1fb4   :  { %6603 = vmatprep.subr.bf16.mxu0 %v7093_v0 }
0x1fb7   :  { %6605 = vmatpush3.bf16.msra.mxu0 %v7299_v41 }
0x1fb8   :  { %6612 = vmatprep.subr.bf16.mxu0 %v7093_v0 }
0x2085   :  { %v2859_v28 = vpop.f32.mrb[36].mxu0 }
0x2086   :  { %v5515_v29 = vmul.f32 -1.442695, %v2859_v28  ;;  %v6147_v31 = vpop.f32.mrb[37].mxu0 }
0x2088   :  { %6867 = vpow2.f32 %v5515_v29  ;;  %v3265_v29 = vld [vmem:[#allocation2 + $0x28] sm:$0xff] }
0x2092   :  { %v6868_v32 = vpop.eup %6867 }
0x2093   :  { %v2866_v34 = vadd.f32 1.0, %v6868_v32 }
0x2095   :  { %6869 = vrcp.f32 %v2866_v34 }
0x209f   :  { %v6870_v5 = vpop.eup %6869 }
0x20a0   :  { %v2869_v36 = vmul.f32 2.0, %v6870_v5 }
0x20a2   :  { %v2870_v37 = vmul.f32 %v2869_v36, %v2708_v16 }
0x20a4   :  { %6157 = vmatmul.mubr.msk.f32.vlgmr.msra.gmra.mrb[38].mxu0 %vm195_vm2, %v2870_v37  ;;  %6168 = vmatmul.mubr.msk.f32.vlgmr.msra.gmra.mrb[30].mxu1 %vm195_vm2, %v2870_v37 }
0x20a5   :  { %6614 = vmatpush3.bf16.msra.mxu0 %v7230_v4  ;;  %6174 = vmatprep.mubr.msk.f32.mxu0 %vm7094_vm0, %v7095_v1 }
0x20a6   :  { %6621 = vmatprep.subr.bf16.mxu0 %v7093_v0  ;;  %6617 = vmatpush3.bf16.msra.mxu1 %v7238_v8 }
0x20a7   :  { %6618 = vmatprep.subr.bf16.mxu1 %v7093_v0  ;;  %6185 = vmatprep.mubr.msk.f32.mxu1 %vm7094_vm0, %v7095_v1 }
0x20aa   :  { %6620 = vmatpush3.bf16.msra.mxu1 %v7260_v14 }
0x20ab   :  { %6630 = vmatprep.subr.bf16.mxu1 %v7093_v0 }
0x2177   :  { %v2940_v38 = vpop.f32.mrb[38].mxu0  ;;  %v3018_v40 = vpop.f32.mrb[30].mxu1 }
0x2178   :  { %v5517_v42 = vmul.f32 -1.442695, %v2940_v38  ;;  %v6158_v43 = vpop.f32.mrb[39].mxu0  ;;  %v6169_v15 = vpop.f32.mrb[31].mxu1 }
0x217a   :  { %6871 = vpow2.f32 %v5517_v42 }
0x2184   :  { %v6872_v44 = vpop.eup %6871 }
0x2185   :  { %v2947_v46 = vadd.f32 1.0, %v6872_v44 }
0x2187   :  { %6873 = vrcp.f32 %v2947_v46 }
0x2191   :  { %v6874_v47 = vpop.eup %6873 }
0x2192   :  { %v2950_v49 = vmul.f32 2.0, %v6874_v47 }
0x2194   :  { %v2951_v50 = vmul.f32 %v2950_v49, %v2789_v27 }
0x2196   :  { %6175 = vmatmul.mubr.msk.f32.vlgmr.msra.gmra.mrb[40].mxu0 %vm121_vm1, %v2951_v50 }
0x2197   :  { %6623 = vmatpush3.bf16.msra.mxu0 %v7241_v11  ;;  %6192 = vmatprep.mubr.msk.f32.mxu0 %vm7094_vm0, %v7095_v1 }
0x2198   :  { %6624 = vmatprep.subr.bf16.mxu0 %v7093_v0 }
0x219a   :  { %6193 = vmatmul.mubr.msk.f32.vlgmr.msra.gmra.mrb[42].mxu0 %vm121_vm1, %v2951_v50 }
0x219b   :  { %6626 = vmatpush3.bf16.msra.mxu0 %v7293_v39  ;;  %6203 = vmatprep.mubr.msk.f32.mxu0 %vm7094_vm0, %v7095_v1 }
0x219c   :  { %6627 = vmatprep.subr.bf16.mxu0 %v7093_v0 }
0x219f   :  { %6629 = vmatpush3.bf16.msra.mxu0 %v7299_v41 }
0x21a0   :  { %6639 = vmatprep.subr.bf16.mxu0 %v7093_v0 }
0x2269   :  { %v3091_v51 = vpop.f32.mrb[40].mxu0 }
0x226a   :  { %v3092_v52 = vadd.f32 %v3091_v51, %v3018_v40  ;;  %v6176_v21 = vpop.f32.mrb[41].mxu0 }
0x226c   :  { %v3095_v56 = vadd.f32 %v7587_v54, %v3092_v52 }
0x226d   :  { %v3235_v30 = vpop.f32.mrb[42].mxu0 }
0x226e   :  { %6186 = vmatmul.mubr.msk.f32.vlgmr.msra.gmra.mrb[32].mxu1 %vm195_vm2, %v3095_v56  ;;  %v6194_v57 = vpop.f32.mrb[43].mxu0 }
0x226f   :  { %6632 = vmatpush3.bf16.msra.mxu1 %v7312_v48  ;;  %6210 = vmatprep.mubr.msk.f32.mxu1 %vm7094_vm0, %v7095_v1 }
0x2270   :  { %6633 = vmatprep.subr.bf16.mxu1 %v7093_v0 }
0x2341   :  { %v3165_v58 = vpop.f32.mrb[32].mxu1 }
0x2342   :  { %v3236_v59 = vadd.f32 %v3235_v30, %v3165_v58  ;;  %v6187_v60 = vpop.f32.mrb[33].mxu1 }
0x2344   :  { %v3239_v62 = vadd.f32 %v7598_v61, %v3236_v59 }
0x2346   :  { %6875 = vtanh.f32 %v3239_v62  ;;  %v5522_v2 = vmul.f32 -1.442695, %v3239_v62 }
0x2348   :  { %6877 = vpow2.f32 %v5522_v2 }
0x2350   :  { %v6876_v63 = vpop.eup %6875 }
0x2351   :  { %3249 = vrot.lane.b32.xlu0 %v6876_v63, %s7096_s26 }
0x2352   :  { %v6878_v3 = vpop.eup %6877 }
0x2353   :  { %v3243_v6 = vadd.f32 1.0, %v6878_v3 }
0x2355   :  { %6879 = vrcp.f32 %v3243_v6 }
0x235f   :  { %v6880_v7 = vpop.eup %6879 }
0x2360   :  { %v3247_v12 = vmul.f32 %v6880_v7, %v7526_v53 }
0x23c3   :  { %v3250_v10 = vpop.permute.xlu0 %3249 }
0x23c4   :  { %v3252_v35 = vmul.f32 %v6880_v7, %v3250_v10 }
0x23c6   :  { %3254 = vrot.lane.b32.xlu1 %v3252_v35, %s7097_s0 }
0x2438   :  { %v3255_v13 = vpop.permute.xlu1 %3254 }
0x2439   :  { %v7604_v16 = vadd.f32 %v3255_v13, %v3247_v12 }
0x243b   :  { %6881 = vtanh.f32 %v7604_v16 }
0x2445   :  { %v6882_v17 = vpop.eup %6881 }
0x2446   :  { %3260 = vrot.lane.b32.xlu0 %v6882_v17, %s7096_s26 }
0x24b8   :  { %v3261_v18 = vpop.permute.xlu0 %3260 }
0x24b9   :  { %v3263_v20 = vmul.f32 %v6880_v7, %v3261_v18 }
0x24bb   :  { %3267 = vrot.lane.b32.xlu1 %v3263_v20, %s7097_s0 }
0x252d   :  { %v7609_v22 = vpop.permute.xlu1 %3267 }
0x252e   :  { %6204 = vmatmul.mubr.msk.f32.vlgmr.msra.gmra.mrb[44].mxu0 %vm195_vm2, %v7609_v22 }
0x252f   :  { %6641 = vmatpush3.bf16.msra.mxu0 %v7312_v48  ;;  %6228 = vmatprep.mubr.msk.f32.mxu0 %vm7094_vm0, %v7095_v1 }
0x2530   :  { %6642 = vmatprep.subr.bf16.mxu0 %v7093_v0 }
0x2601   :  { %v3337_v53 = vpop.f32.mrb[44].mxu0 }
0x2602   :  { %v5524_v24 = vmul.f32 -1.442695, %v3337_v53  ;;  %v6205_v25 = vpop.f32.mrb[45].mxu0 }
0x2604   :  { %6883 = vpow2.f32 %v5524_v24 }
0x260e   :  { %v6884_v26 = vpop.eup %6883 }
0x260f   :  { %v3344_v27 = vadd.f32 1.0, %v6884_v26 }
0x2611   :  { %6885 = vrcp.f32 %v3344_v27 }
0x261b   :  { %v6886_v28 = vpop.eup %6885 }
0x261c   :  { %v3347_v31 = vmul.f32 2.0, %v6886_v28 }
0x261e   :  { %v3348_v32 = vmul.f32 %v3347_v31, %v3265_v29 }
0x2620   :  { %6211 = vmatmul.mubr.msk.f32.vlgmr.msra.gmra.mrb[34].mxu1 %vm121_vm1, %v3348_v32 }
0x2621   :  { %6635 = vmatpush3.bf16.msra.mxu1 %v7293_v39  ;;  %6221 = vmatprep.mubr.msk.f32.mxu1 %vm7094_vm0, %v7095_v1 }
0x2622   :  { %6636 = vmatprep.subr.bf16.mxu1 %v7093_v0 }
0x2625   :  { %6638 = vmatpush3.bf16.msra.mxu1 %v7299_v41 }
0x2626   :  { %6648 = vmatprep.subr.bf16.mxu1 %v7093_v0 }
0x26f3   :  { %v3418_v34 = vpop.f32.mrb[34].mxu1 }
0x26f4   :  { %v5526_v5 = vmul.f32 -1.442695, %v3418_v34  ;;  %v6212_v36 = vpop.f32.mrb[35].mxu1 }
0x26f6   :  { %6887 = vpow2.f32 %v5526_v5 }
0x2700   :  { %v6888_v37 = vpop.eup %6887 }
0x2701   :  { %v3425_v38 = vadd.f32 1.0, %v6888_v37 }
0x2703   :  { %6889 = vrcp.f32 %v3425_v38 }
0x270d   :  { %v6890_v40 = vpop.eup %6889 }
0x270e   :  { %v3428_v42 = vmul.f32 2.0, %v6890_v40 }
0x2710   :  { %v3430_v43 = vmul.f32 %v3428_v42, %v7609_v22 }
0x2712   :  { %6222 = vmatmul.mubr.msk.f32.vlgmr.msra.gmra.mrb[36].mxu1 %vm195_vm2, %v3430_v43 }
0x2713   :  { %6650 = vmatpush3.bf16.msra.mxu1 %v7342_v19  ;;  %6250 = vmatprep.mubr.msk.f32.mxu1 %vm7094_vm0, %v7095_v1 }
0x2714   :  { %6651 = vmatprep.subr.bf16.mxu1 %v7093_v0 }
0x2717   :  { %6653 = vmatpush3.bf16.msra.mxu1 %v7352_v23 }
0x2718   :  { %6657 = vmatprep.subr.bf16.mxu1 %v7093_v0 }
0x27e5   :  { %v3500_v15 = vpop.f32.mrb[36].mxu1 }
0x27e6   :  { %v5528_v44 = vmul.f32 -1.442695, %v3500_v15  ;;  %v6223_v46 = vpop.f32.mrb[37].mxu1 }
0x27e8   :  { %6891 = vpow2.f32 %v5528_v44 }
0x27f2   :  { %v6892_v47 = vpop.eup %6891 }
0x27f3   :  { %v3507_v49 = vadd.f32 1.0, %v6892_v47 }
0x27f5   :  { %6893 = vrcp.f32 %v3507_v49 }
0x27ff   :  { %v6894_v50 = vpop.eup %6893 }
0x2800   :  { %v3510_v51 = vmul.f32 2.0, %v6894_v50 }
0x2802   :  { %v3511_v52 = vmul.f32 %v3510_v51, %v3348_v32 }
0x2804   :  { %6229 = vmatmul.mubr.msk.f32.vlgmr.msra.gmra.mrb[46].mxu0 %vm121_vm1, %v3511_v52 }
0x2805   :  { %6644 = vmatpush3.bf16.msra.mxu0 %v7293_v39  ;;  %6239 = vmatprep.mubr.msk.f32.mxu0 %vm7094_vm0, %v7095_v1 }
0x2806   :  { %6645 = vmatprep.subr.bf16.mxu0 %v7093_v0 }
0x2809   :  { %6647 = vmatpush3.bf16.msra.mxu0 %v7299_v41 }
0x280a   :  { %6654 = vmatprep.subr.bf16.mxu0 %v7093_v0 }
0x28d7   :  { %v3581_v21 = vpop.f32.mrb[46].mxu0 }
0x28d8   :  { %v5530_v56 = vmul.f32 -1.442695, %v3581_v21  ;;  %v6230_v30 = vpop.f32.mrb[47].mxu0 }
0x28d9   :  { %v3987_v30 = vld [vmem:[#allocation2 + $0x30] sm:$0xff] }
0x28da   :  { %6895 = vpow2.f32 %v5530_v56 }
0x28e4   :  { %v6896_v57 = vpop.eup %6895 }
0x28e5   :  { %v3588_v58 = vadd.f32 1.0, %v6896_v57 }
0x28e7   :  { %6897 = vrcp.f32 %v3588_v58 }
0x28f1   :  { %v6898_v59 = vpop.eup %6897 }
0x28f2   :  { %v3591_v60 = vmul.f32 2.0, %v6898_v59 }
0x28f4   :  { %v3592_v62 = vmul.f32 %v3591_v60, %v3430_v43 }
0x28f6   :  { %6240 = vmatmul.mubr.msk.f32.vlgmr.msra.gmra.mrb[48].mxu0 %vm195_vm2, %v3592_v62  ;;  %6251 = vmatmul.mubr.msk.f32.vlgmr.msra.gmra.mrb[38].mxu1 %vm195_vm2, %v3592_v62 }
0x28f7   :  { %6656 = vmatpush3.bf16.msra.mxu0 %v7230_v4  ;;  %6257 = vmatprep.mubr.msk.f32.mxu0 %vm7094_vm0, %v7095_v1 }
0x28f8   :  { %6663 = vmatprep.subr.bf16.mxu0 %v7093_v0  ;;  %6659 = vmatpush3.bf16.msra.mxu1 %v7238_v8 }
0x28f9   :  { %6660 = vmatprep.subr.bf16.mxu1 %v7093_v0  ;;  %6268 = vmatprep.mubr.msk.f32.mxu1 %vm7094_vm0, %v7095_v1 }
0x28fc   :  { %6662 = vmatpush3.bf16.msra.mxu1 %v7260_v14 }
0x28fd   :  { %6672 = vmatprep.subr.bf16.mxu1 %v7093_v0 }
0x29c9   :  { %v3662_v63 = vpop.f32.mrb[48].mxu0  ;;  %v3740_v2 = vpop.f32.mrb[38].mxu1 }
0x29ca   :  { %v5532_v3 = vmul.f32 -1.442695, %v3662_v63  ;;  %v6241_v6 = vpop.f32.mrb[49].mxu0  ;;  %v6252_v7 = vpop.f32.mrb[39].mxu1 }
0x29cc   :  { %6899 = vpow2.f32 %v5532_v3 }
0x29d6   :  { %v6900_v10 = vpop.eup %6899 }
0x29d7   :  { %v3669_v35 = vadd.f32 1.0, %v6900_v10 }
0x29d9   :  { %6901 = vrcp.f32 %v3669_v35 }
0x29e3   :  { %v6902_v12 = vpop.eup %6901 }
0x29e4   :  { %v3672_v13 = vmul.f32 2.0, %v6902_v12 }
0x29e6   :  { %v3673_v17 = vmul.f32 %v3672_v13, %v3511_v52 }
0x29e8   :  { %6258 = vmatmul.mubr.msk.f32.vlgmr.msra.gmra.mrb[50].mxu0 %vm121_vm1, %v3673_v17 }
0x29e9   :  { %6665 = vmatpush3.bf16.msra.mxu0 %v7241_v11  ;;  %6275 = vmatprep.mubr.msk.f32.mxu0 %vm7094_vm0, %v7095_v1 }
0x29ea   :  { %6666 = vmatprep.subr.bf16.mxu0 %v7093_v0 }
0x29ec   :  { %6276 = vmatmul.mubr.msk.f32.vlgmr.msra.gmra.mrb[52].mxu0 %vm121_vm1, %v3673_v17 }
0x29ed   :  { %6668 = vmatpush3.bf16.msra.mxu0 %v7293_v39  ;;  %6286 = vmatprep.mubr.msk.f32.mxu0 %vm7094_vm0, %v7095_v1 }
0x29ee   :  { %6669 = vmatprep.subr.bf16.mxu0 %v7093_v0 }
0x29f1   :  { %6671 = vmatpush3.bf16.msra.mxu0 %v7299_v41 }
0x29f2   :  { %6681 = vmatprep.subr.bf16.mxu0 %v7093_v0 }
0x2abb   :  { %v3813_v18 = vpop.f32.mrb[50].mxu0 }
0x2abc   :  { %v3814_v20 = vadd.f32 %v3813_v18, %v3740_v2  ;;  %v6259_v53 = vpop.f32.mrb[51].mxu0 }
0x2abe   :  { %v3817_v24 = vadd.f32 %v7587_v54, %v3814_v20 }
0x2abf   :  { %v3957_v25 = vpop.f32.mrb[52].mxu0 }
0x2ac0   :  { %6269 = vmatmul.mubr.msk.f32.vlgmr.msra.gmra.mrb[40].mxu1 %vm195_vm2, %v3817_v24  ;;  %v6277_v26 = vpop.f32.mrb[53].mxu0 }
0x2ac1   :  { %6674 = vmatpush3.bf16.msra.mxu1 %v7312_v48  ;;  %6293 = vmatprep.mubr.msk.f32.mxu1 %vm7094_vm0, %v7095_v1 }
0x2ac2   :  { %6675 = vmatprep.subr.bf16.mxu1 %v7093_v0 }
0x2b93   :  { %v3887_v27 = vpop.f32.mrb[40].mxu1 }
0x2b94   :  { %v3958_v28 = vadd.f32 %v3957_v25, %v3887_v27  ;;  %v6270_v29 = vpop.f32.mrb[41].mxu1 }
0x2b96   :  { %v3961_v31 = vadd.f32 %v7598_v61, %v3958_v28 }
0x2b98   :  { %6903 = vtanh.f32 %v3961_v31  ;;  %v5537_v34 = vmul.f32 -1.442695, %v3961_v31 }
0x2b9a   :  { %6905 = vpow2.f32 %v5537_v34 }
0x2ba2   :  { %v6904_v32 = vpop.eup %6903 }
0x2ba3   :  { %3971 = vrot.lane.b32.xlu0 %v6904_v32, %s7096_s26 }
0x2ba4   :  { %v6906_v5 = vpop.eup %6905 }
0x2ba5   :  { %v3965_v36 = vadd.f32 1.0, %v6906_v5 }
0x2ba7   :  { %6907 = vrcp.f32 %v3965_v36 }
0x2bb1   :  { %v6908_v37 = vpop.eup %6907 }
0x2bb2   :  { %v3969_v42 = vmul.f32 %v6908_v37, %v7604_v16 }
0x2c15   :  { %v3972_v38 = vpop.permute.xlu0 %3971 }
0x2c16   :  { %v3974_v40 = vmul.f32 %v6908_v37, %v3972_v38 }
0x2c18   :  { %3976 = vrot.lane.b32.xlu1 %v3974_v40, %s7097_s0 }
0x2c8a   :  { %v3977_v43 = vpop.permute.xlu1 %3976 }
0x2c8b   :  { %v7673_v15 = vadd.f32 %v3977_v43, %v3969_v42 }
0x2c8d   :  { %6909 = vtanh.f32 %v7673_v15 }
0x2c97   :  { %v6910_v44 = vpop.eup %6909 }
0x2c98   :  { %3982 = vrot.lane.b32.xlu0 %v6910_v44, %s7096_s26 }
0x2d0a   :  { %v3983_v46 = vpop.permute.xlu0 %3982 }
0x2d0b   :  { %v7677_v47 = vmul.f32 %v6908_v37, %v3983_v46 }
0x2d0d   :  { %3989 = vrot.lane.b32.xlu1 %v7677_v47, %s7097_s0 }
0x2d7f   :  { %v3990_v49 = vpop.permute.xlu1 %3989 }
0x2d80   :  { %6287 = vmatmul.mubr.msk.f32.vlgmr.msra.gmra.mrb[54].mxu0 %vm195_vm2, %v3990_v49 }
0x2d81   :  { %6683 = vmatpush3.bf16.msra.mxu0 %v7312_v48  ;;  %6311 = vmatprep.mubr.msk.f32.mxu0 %vm7094_vm0, %v7095_v1 }
0x2d82   :  { %6684 = vmatprep.subr.bf16.mxu0 %v7093_v0 }
0x2e53   :  { %v4059_v16 = vpop.f32.mrb[54].mxu0 }
0x2e54   :  { %v5539_v50 = vmul.f32 -1.442695, %v4059_v16  ;;  %v6288_v51 = vpop.f32.mrb[55].mxu0 }
0x2e56   :  { %6911 = vpow2.f32 %v5539_v50 }
0x2e60   :  { %v6912_v52 = vpop.eup %6911 }
0x2e61   :  { %v4066_v21 = vadd.f32 1.0, %v6912_v52 }
0x2e63   :  { %6913 = vrcp.f32 %v4066_v21 }
0x2e6d   :  { %v6914_v56 = vpop.eup %6913 }
0x2e6e   :  { %v4069_v57 = vmul.f32 2.0, %v6914_v56 }
0x2e70   :  { %v4070_v58 = vmul.f32 %v4069_v57, %v3987_v30 }
0x2e72   :  { %6294 = vmatmul.mubr.msk.f32.vlgmr.msra.gmra.mrb[42].mxu1 %vm121_vm1, %v4070_v58 }
0x2e73   :  { %6677 = vmatpush3.bf16.msra.mxu1 %v7293_v39  ;;  %6304 = vmatprep.mubr.msk.f32.mxu1 %vm7094_vm0, %v7095_v1 }
0x2e74   :  { %6678 = vmatprep.subr.bf16.mxu1 %v7093_v0 }
0x2e77   :  { %6680 = vmatpush3.bf16.msra.mxu1 %v7299_v41 }
0x2e78   :  { %6690 = vmatprep.subr.bf16.mxu1 %v7093_v0 }
0x2f45   :  { %v4140_v59 = vpop.f32.mrb[42].mxu1 }
0x2f46   :  { %v5541_v60 = vmul.f32 -1.442695, %v4140_v59  ;;  %v6295_v62 = vpop.f32.mrb[43].mxu1 }
0x2f48   :  { %6915 = vpow2.f32 %v5541_v60 }
0x2f52   :  { %v6916_v63 = vpop.eup %6915 }
0x2f53   :  { %v4147_v2 = vadd.f32 1.0, %v6916_v63 }
0x2f55   :  { %6917 = vrcp.f32 %v4147_v2 }
0x2f5f   :  { %v6918_v3 = vpop.eup %6917 }
0x2f60   :  { %v4150_v6 = vmul.f32 2.0, %v6918_v3 }
0x2f62   :  { %v4152_v7 = vmul.f32 %v4150_v6, %v3990_v49 }
0x2f64   :  { %6305 = vmatmul.mubr.msk.f32.vlgmr.msra.gmra.mrb[44].mxu1 %vm195_vm2, %v4152_v7 }
0x2f65   :  { %6692 = vmatpush3.bf16.msra.mxu1 %v7342_v19  ;;  %6333 = vmatprep.mubr.msk.f32.mxu1 %vm7094_vm0, %v7095_v1 }
0x2f66   :  { %6693 = vmatprep.subr.bf16.mxu1 %v7093_v0 }
0x2f69   :  { %6695 = vmatpush3.bf16.msra.mxu1 %v7352_v23 }
0x2f6a   :  { %6699 = vmatprep.subr.bf16.mxu1 %v7093_v0 }
0x3037   :  { %v4222_v10 = vpop.f32.mrb[44].mxu1 }
0x3038   :  { %v5543_v35 = vmul.f32 -1.442695, %v4222_v10  ;;  %v6306_v12 = vpop.f32.mrb[45].mxu1 }
0x303a   :  { %6919 = vpow2.f32 %v5543_v35 }
0x3044   :  { %v6920_v13 = vpop.eup %6919 }
0x3045   :  { %v4229_v17 = vadd.f32 1.0, %v6920_v13 }
0x3047   :  { %6921 = vrcp.f32 %v4229_v17 }
0x3051   :  { %v6922_v18 = vpop.eup %6921 }
0x3052   :  { %v4232_v20 = vmul.f32 2.0, %v6922_v18 }
0x3054   :  { %v4233_v53 = vmul.f32 %v4232_v20, %v4070_v58 }
0x3056   :  { %6312 = vmatmul.mubr.msk.f32.vlgmr.msra.gmra.mrb[56].mxu0 %vm121_vm1, %v4233_v53 }
0x3057   :  { %6686 = vmatpush3.bf16.msra.mxu0 %v7293_v39  ;;  %6322 = vmatprep.mubr.msk.f32.mxu0 %vm7094_vm0, %v7095_v1 }
0x3058   :  { %6687 = vmatprep.subr.bf16.mxu0 %v7093_v0 }
0x305b   :  { %6689 = vmatpush3.bf16.msra.mxu0 %v7299_v41 }
0x305c   :  { %6696 = vmatprep.subr.bf16.mxu0 %v7093_v0 }
0x3129   :  { %v4303_v24 = vpop.f32.mrb[56].mxu0 }
0x312a   :  { %v5545_v25 = vmul.f32 -1.442695, %v4303_v24  ;;  %v6313_v26 = vpop.f32.mrb[57].mxu0 }
0x312c   :  { %6923 = vpow2.f32 %v5545_v25 }
0x3136   :  { %v6924_v27 = vpop.eup %6923 }
0x3137   :  { %v4310_v28 = vadd.f32 1.0, %v6924_v27  ;;  %v4709_v27 = vld [vmem:[#allocation2 + $0x38] sm:$0xff] }
0x3139   :  { %6925 = vrcp.f32 %v4310_v28 }
0x3143   :  { %v6926_v29 = vpop.eup %6925 }
0x3144   :  { %v4313_v31 = vmul.f32 2.0, %v6926_v29 }
0x3146   :  { %v4314_v32 = vmul.f32 %v4313_v31, %v4152_v7 }
0x3148   :  { %6323 = vmatmul.mubr.msk.f32.vlgmr.msra.gmra.mrb[58].mxu0 %vm195_vm2, %v4314_v32  ;;  %6334 = vmatmul.mubr.msk.f32.vlgmr.msra.gmra.mrb[46].mxu1 %vm195_vm2, %v4314_v32 }
0x3149   :  { %6698 = vmatpush3.bf16.msra.mxu0 %v7230_v4  ;;  %6340 = vmatprep.mubr.msk.f32.mxu0 %vm7094_vm0, %v7095_v1 }
0x314a   :  { %6705 = vmatprep.subr.bf16.mxu0 %v7093_v0  ;;  %6701 = vmatpush3.bf16.msra.mxu1 %v7238_v8 }
0x314b   :  { %6702 = vmatprep.subr.bf16.mxu1 %v7093_v0  ;;  %6351 = vmatprep.mubr.msk.f32.mxu1 %vm7094_vm0, %v7095_v1 }
0x314e   :  { %6704 = vmatpush3.bf16.msra.mxu1 %v7260_v14 }
0x314f   :  { %6714 = vmatprep.subr.bf16.mxu1 %v7093_v0 }
0x321b   :  { %v4384_v34 = vpop.f32.mrb[58].mxu0  ;;  %v4462_v5 = vpop.f32.mrb[46].mxu1 }
0x321c   :  { %v5547_v36 = vmul.f32 -1.442695, %v4384_v34  ;;  %v6324_v37 = vpop.f32.mrb[59].mxu0  ;;  %v6335_v38 = vpop.f32.mrb[47].mxu1 }
0x321e   :  { %6927 = vpow2.f32 %v5547_v36 }
0x3228   :  { %v6928_v40 = vpop.eup %6927 }
0x3229   :  { %v4391_v42 = vadd.f32 1.0, %v6928_v40 }
0x322b   :  { %6929 = vrcp.f32 %v4391_v42 }
0x3235   :  { %v6930_v43 = vpop.eup %6929 }
0x3236   :  { %v4394_v44 = vmul.f32 2.0, %v6930_v43 }
0x3238   :  { %v4395_v46 = vmul.f32 %v4394_v44, %v4233_v53 }
0x323a   :  { %6341 = vmatmul.mubr.msk.f32.vlgmr.msra.gmra.mrb[60].mxu0 %vm121_vm1, %v4395_v46 }
0x323b   :  { %6707 = vmatpush3.bf16.msra.mxu0 %v7241_v11  ;;  %6358 = vmatprep.mubr.msk.f32.mxu0 %vm7094_vm0, %v7095_v1 }
0x323c   :  { %6708 = vmatprep.subr.bf16.mxu0 %v7093_v0 }
0x323e   :  { %6359 = vmatmul.mubr.msk.f32.vlgmr.msra.gmra.mrb[62].mxu0 %vm121_vm1, %v4395_v46 }
0x323f   :  { %6710 = vmatpush3.bf16.msra.mxu0 %v7293_v39  ;;  %6369 = vmatprep.mubr.msk.f32.mxu0 %vm7094_vm0, %v7095_v1 }
0x3240   :  { %6711 = vmatprep.subr.bf16.mxu0 %v7093_v0 }
0x3243   :  { %6713 = vmatpush3.bf16.msra.mxu0 %v7299_v41 }
0x3244   :  { %6723 = vmatprep.subr.bf16.mxu0 %v7093_v0 }
0x330d   :  { %v4535_v49 = vpop.f32.mrb[60].mxu0 }
0x330e   :  { %v4536_v16 = vadd.f32 %v4535_v49, %v4462_v5  ;;  %v6342_v50 = vpop.f32.mrb[61].mxu0 }
0x3310   :  { %v4539_v51 = vadd.f32 %v7587_v54, %v4536_v16 }
0x3311   :  { %v4679_v52 = vpop.f32.mrb[62].mxu0 }
0x3312   :  { %6352 = vmatmul.mubr.msk.f32.vlgmr.msra.gmra.mrb[48].mxu1 %vm195_vm2, %v4539_v51  ;;  %v6360_v21 = vpop.f32.mrb[63].mxu0 }
0x3313   :  { %6716 = vmatpush3.bf16.msra.mxu1 %v7312_v48  ;;  %6376 = vmatprep.mubr.msk.f32.mxu1 %vm7094_vm0, %v7095_v1 }
0x3314   :  { %6717 = vmatprep.subr.bf16.mxu1 %v7093_v0 }
0x33e5   :  { %v4609_v56 = vpop.f32.mrb[48].mxu1 }
0x33e6   :  { %v4680_v30 = vadd.f32 %v4679_v52, %v4609_v56  ;;  %v6353_v57 = vpop.f32.mrb[49].mxu1 }
0x33e8   :  { %v4683_v58 = vadd.f32 %v7598_v61, %v4680_v30 }
0x33ea   :  { %6931 = vtanh.f32 %v4683_v58  ;;  %v5552_v60 = vmul.f32 -1.442695, %v4683_v58 }
0x33ec   :  { %6933 = vpow2.f32 %v5552_v60 }
0x33f4   :  { %v6932_v59 = vpop.eup %6931 }
0x33f5   :  { %4693 = vrot.lane.b32.xlu0 %v6932_v59, %s7096_s26 }
0x33f6   :  { %v6934_v62 = vpop.eup %6933 }
0x33f7   :  { %v4687_v63 = vadd.f32 1.0, %v6934_v62 }
0x33f9   :  { %6935 = vrcp.f32 %v4687_v63 }
0x3403   :  { %v6936_v2 = vpop.eup %6935 }
0x3404   :  { %v4691_v7 = vmul.f32 %v6936_v2, %v7673_v15 }
0x3467   :  { %v4694_v3 = vpop.permute.xlu0 %4693 }
0x3468   :  { %v4696_v6 = vmul.f32 %v6936_v2, %v4694_v3 }
0x346a   :  { %4698 = vrot.lane.b32.xlu1 %v4696_v6, %s7097_s0 }
0x34dc   :  { %v4699_v10 = vpop.permute.xlu1 %4698 }
0x34dd   :  { %v7741_v35 = vadd.f32 %v4699_v10, %v4691_v7 }
0x34df   :  { %6937 = vtanh.f32 %v7741_v35 }
0x34e9   :  { %v6938_v12 = vpop.eup %6937 }
0x34ea   :  { %4704 = vrot.lane.b32.xlu0 %v6938_v12, %s7096_s26 }
0x355c   :  { %v4705_v13 = vpop.permute.xlu0 %4704 }
0x355d   :  { %v7745_v17 = vmul.f32 %v6936_v2, %v4705_v13 }
0x355f   :  { %4711 = vrot.lane.b32.xlu1 %v7745_v17, %s7097_s0 }
0x35d1   :  { %v4712_v18 = vpop.permute.xlu1 %4711 }
0x35d2   :  { %6370 = vmatmul.mubr.msk.f32.vlgmr.msra.gmra.mrb[64].mxu0 %vm195_vm2, %v4712_v18 }
0x35d3   :  { %6725 = vmatpush3.bf16.msra.mxu0 %v7312_v48  ;;  %6394 = vmatprep.mubr.msk.f32.mxu0 %vm7094_vm0, %v7095_v1 }
0x35d4   :  { %6726 = vmatprep.subr.bf16.mxu0 %v7093_v0 }
0x36a5   :  { %v4781_v15 = vpop.f32.mrb[64].mxu0 }
0x36a6   :  { %v5554_v20 = vmul.f32 -1.442695, %v4781_v15  ;;  %v6371_v53 = vpop.f32.mrb[65].mxu0 }
0x36a8   :  { %6939 = vpow2.f32 %v5554_v20 }
0x36b2   :  { %v6940_v24 = vpop.eup %6939 }
0x36b3   :  { %v4788_v25 = vadd.f32 1.0, %v6940_v24 }
0x36b5   :  { %6941 = vrcp.f32 %v4788_v25 }
0x36bf   :  { %v6942_v26 = vpop.eup %6941 }
0x36c0   :  { %v4791_v28 = vmul.f32 2.0, %v6942_v26 }
0x36c2   :  { %v4792_v29 = vmul.f32 %v4791_v28, %v4709_v27 }
0x36c4   :  { %6377 = vmatmul.mubr.msk.f32.vlgmr.msra.gmra.mrb[50].mxu1 %vm121_vm1, %v4792_v29 }
0x36c5   :  { %6719 = vmatpush3.bf16.msra.mxu1 %v7293_v39  ;;  %6387 = vmatprep.mubr.msk.f32.mxu1 %vm7094_vm0, %v7095_v1 }
0x36c6   :  { %6720 = vmatprep.subr.bf16.mxu1 %v7093_v0 }
0x36c9   :  { %6722 = vmatpush3.bf16.msra.mxu1 %v7299_v41 }
0x36ca   :  { %6732 = vmatprep.subr.bf16.mxu1 %v7093_v0 }
0x3797   :  { %v4862_v48 = vpop.f32.mrb[50].mxu1 }
0x3798   :  { %v5556_v31 = vmul.f32 -1.442695, %v4862_v48  ;;  %v6378_v32 = vpop.f32.mrb[51].mxu1 }
0x379a   :  { %6943 = vpow2.f32 %v5556_v31 }
0x37a4   :  { %v6944_v34 = vpop.eup %6943 }
0x37a5   :  { %v4869_v5 = vadd.f32 1.0, %v6944_v34 }
0x37a7   :  { %6945 = vrcp.f32 %v4869_v5 }
0x37b1   :  { %v6946_v36 = vpop.eup %6945 }
0x37b2   :  { %v4872_v37 = vmul.f32 2.0, %v6946_v36 }
0x37b4   :  { %v4874_v38 = vmul.f32 %v4872_v37, %v4712_v18 }
0x37b6   :  { %6388 = vmatmul.mubr.msk.f32.vlgmr.msra.gmra.mrb[52].mxu1 %vm195_vm2, %v4874_v38 }
0x37b7   :  { %6734 = vmatpush3.bf16.msra.mxu1 %v7342_v19  ;;  %6416 = vmatprep.mubr.msk.f32.mxu1 %vm7094_vm0, %v7095_v1 }
0x37b8   :  { %6735 = vmatprep.subr.bf16.mxu1 %v7093_v0 }
0x37bb   :  { %6737 = vmatpush3.bf16.msra.mxu1 %v7352_v23 }
0x37bc   :  { %6741 = vmatprep.subr.bf16.mxu1 %v7093_v0 }
0x3889   :  { %v4944_v40 = vpop.f32.mrb[52].mxu1 }
0x388a   :  { %v5558_v42 = vmul.f32 -1.442695, %v4944_v40  ;;  %v6389_v43 = vpop.f32.mrb[53].mxu1 }
0x388c   :  { %6947 = vpow2.f32 %v5558_v42 }
0x3896   :  { %v6948_v44 = vpop.eup %6947 }
0x3897   :  { %v4951_v46 = vadd.f32 1.0, %v6948_v44 }
0x3899   :  { %6949 = vrcp.f32 %v4951_v46 }
0x38a3   :  { %v6950_v49 = vpop.eup %6949 }
0x38a4   :  { %v4954_v16 = vmul.f32 2.0, %v6950_v49 }
0x38a6   :  { %v4955_v50 = vmul.f32 %v4954_v16, %v4792_v29 }
0x38a8   :  { %6395 = vmatmul.mubr.msk.f32.vlgmr.msra.gmra.mrb[66].mxu0 %vm121_vm1, %v4955_v50 }
0x38a9   :  { %6728 = vmatpush3.bf16.msra.mxu0 %v7293_v39  ;;  %6405 = vmatprep.mubr.msk.f32.mxu0 %vm7094_vm0, %v7095_v1 }
0x38aa   :  { %6729 = vmatprep.subr.bf16.mxu0 %v7093_v0 }
0x38ad   :  { %6731 = vmatpush3.bf16.msra.mxu0 %v7299_v41 }
0x38ae   :  { %6738 = vmatprep.subr.bf16.mxu0 %v7093_v0 }
0x397b   :  { %v5025_v19 = vpop.f32.mrb[66].mxu0 }
0x397c   :  { %v5560_v23 = vmul.f32 -1.442695, %v5025_v19  ;;  %v6396_v51 = vpop.f32.mrb[67].mxu0 }
0x397e   :  { %6951 = vpow2.f32 %v5560_v23 }
0x3988   :  { %v6952_v52 = vpop.eup %6951 }
0x3989   :  { %v5032_v21 = vadd.f32 1.0, %v6952_v52 }
0x398b   :  { %6953 = vrcp.f32 %v5032_v21 }
0x3995   :  { %v6954_v56 = vpop.eup %6953 }
0x3996   :  { %v5035_v30 = vmul.f32 2.0, %v6954_v56 }
0x3998   :  { %v5036_v57 = vmul.f32 %v5035_v30, %v4874_v38 }
0x399a   :  { %6406 = vmatmul.mubr.msk.f32.vlgmr.msra.gmra.mrb[68].mxu0 %vm195_vm2, %v5036_v57  ;;  %6417 = vmatmul.mubr.msk.f32.vlgmr.msra.gmra.mrb[54].mxu1 %vm195_vm2, %v5036_v57 }
0x399b   :  { %6740 = vmatpush3.bf16.msra.mxu0 %v7230_v4  ;;  %6423 = vmatprep.mubr.msk.f32.mxu0 %vm7094_vm0, %v7095_v1 }
0x399c   :  { %6747 = vmatprep.subr.bf16.mxu0 %v7093_v0  ;;  %6743 = vmatpush3.bf16.msra.mxu1 %v7238_v8 }
0x399d   :  { %6744 = vmatprep.subr.bf16.mxu1 %v7093_v0  ;;  %6434 = vmatprep.mubr.msk.f32.mxu1 %vm7094_vm0, %v7095_v1 }
0x39a0   :  { %6746 = vmatpush3.bf16.msra.mxu1 %v7260_v14 }
0x3a6d   :  { %v5106_v39 = vpop.f32.mrb[68].mxu0  ;;  %v5184_v41 = vpop.f32.mrb[54].mxu1 }
0x3a6e   :  { %v5562_v58 = vmul.f32 -1.442695, %v5106_v39  ;;  %v6407_v59 = vpop.f32.mrb[69].mxu0  ;;  %v6418_v60 = vpop.f32.mrb[55].mxu1 }
0x3a70   :  { %6955 = vpow2.f32 %v5562_v58 }
0x3a7a   :  { %v6956_v4 = vpop.eup %6955 }
0x3a7b   :  { %v5113_v62 = vadd.f32 1.0, %v6956_v4 }
0x3a7d   :  { %6957 = vrcp.f32 %v5113_v62 }
0x3a87   :  { %v6958_v63 = vpop.eup %6957 }
0x3a88   :  { %v5116_v2 = vmul.f32 2.0, %v6958_v63 }
0x3a8a   :  { %v5117_v3 = vmul.f32 %v5116_v2, %v4955_v50 }
0x3a8c   :  { %6424 = vmatmul.mubr.msk.f32.vlgmr.msra.gmra.mrb[70].mxu0 %vm121_vm1, %v5117_v3 }
0x3a8d   :  { %6749 = vmatpush3.bf16.msra.mxu0 %v7241_v11  ;;  %6441 = vmatprep.mubr.msk.f32.mxu0 %vm7094_vm0, %v7095_v1 }
0x3a90   :  { %6442 = vmatmul.mubr.msk.f32.vlgmr.msra.gmra.mrb[72].mxu0 %vm121_vm1, %v5117_v3 }
0x3b5f   :  { %v5257_v0 = vpop.f32.mrb[70].mxu0 }
0x3b60   :  { %v5258_v8 = vadd.f32 %v5257_v0, %v5184_v41  ;;  %v6425_v14 = vpop.f32.mrb[71].mxu0 }
0x3b62   :  { %v5261_v6 = vadd.f32 %v7587_v54, %v5258_v8 }
0x3b63   :  { %v5401_v7 = vpop.f32.mrb[72].mxu0 }
0x3b64   :  { %6435 = vmatmul.mubr.msk.f32.vlgmr.msra.gmra.mrb[56].mxu1 %vm195_vm2, %v5261_v6  ;;  %v6443_v10 = vpop.f32.mrb[73].mxu0 }
0x3c37   :  { %v5331_v12 = vpop.f32.mrb[56].mxu1 }
0x3c38   :  { %v5402_v13 = vadd.f32 %v5401_v7, %v5331_v12  ;;  %v6436_v18 = vpop.f32.mrb[57].mxu1 }
0x3c3a   :  { %v5405_v15 = vadd.f32 %v7598_v61, %v5402_v13 }
0x3c3c   :  { %6959 = vtanh.f32 %v5405_v15  ;;  %v5567_v1 = vmul.f32 -1.442695, %v5405_v15 }
0x3c3e   :  { %6961 = vpow2.f32 %v5567_v1 }
0x3c46   :  { %v6960_v11 = vpop.eup %6959 }
0x3c47   :  { %5415 = vrot.lane.b32.xlu0 %v6960_v11, %s7096_s26 }
0x3c48   :  { %v6962_v54 = vpop.eup %6961 }
0x3c49   :  { %v5409_v20 = vadd.f32 1.0, %v6962_v54 }
0x3c4b   :  { %2530 = vrot.lane.b32.xlu0 %v7394_v9, %s7096_s26  ;;  %6963 = vrcp.f32 %v5409_v20 }
0x3c4f   :  { %5430 = vrot.lane.b32.xlu0 %v7677_v47, %s7096_s26 }
0x3c53   :  { %5433 = vrot.lane.b32.xlu0 %v7745_v17, %s7098_s7 }
0x3c55   :  { %v6964_v53 = vpop.eup %6963 }
0x3c56   :  { %v5413_v25 = vmul.f32 %v6964_v53, %v7741_v35 }
0x3cb9   :  { %v5416_v61 = vpop.permute.xlu0 %5415 }
0x3cba   :  { %v5418_v24 = vmul.f32 %v6964_v53, %v5416_v61 }
0x3cbc   :  { %5420 = vrot.lane.b32.xlu1 %v5418_v24, %s7097_s0 }
0x3cbd   :  { %v2531_v47 = vpop.permute.xlu0 %2530 }
0x3cbe   :  { %v2536_v34 = vsel %vm195_vm2, %v7306_v45, %v2531_v47 }
0x3cc1   :  { %v5431_v17 = vpop.permute.xlu0 %5430 }
0x3cc2   :  { %v5436_v48 = vsel %vm195_vm2, %v7609_v22, %v5431_v17 }
0x3cc5   :  { %v5434_v28 = vpop.permute.xlu0 %5433 }
0x3cc6   :  { %v5437_v32 = vsel %vm2537_vm3, %v5436_v48, %v5434_v28 }
0x3d2e   :  { %v5421_v26 = vpop.permute.xlu1 %5420 }
0x3d2f   :  { %v5423_v9 = vadd.f32 %v5421_v26, %v5413_v25 }
0x3d31   :  { %6965 = vtanh.f32 %v5423_v9 }
0x3d3b   :  { %v6966_v27 = vpop.eup %6965 }
0x3d3c   :  { %5426 = vrot.lane.b32.xlu1 %v6966_v27, %s7096_s26 }
0x3d40   :  { %2533 = vrot.lane.b32.xlu1 %v7462_v33, %s7098_s7 }
0x3dae   :  { %v5427_v29 = vpop.permute.xlu1 %5426 }
0x3daf   :  { %v5429_v31 = vmul.f32 %v6964_v53, %v5427_v29 }
0x3db1   :  { %v5438_v35 = vsel %vm2539_vm4, %v5437_v32, %v5429_v31 }
0x3db2   :  { %v2534_v5 = vpop.permute.xlu1 %2533  ;;  %5439 = vst [vmem:[#allocation10 + $0x8] sm:$0xff] %v5438_v35 }
0x3db3   :  { %v2538_v33 = vsel %vm2537_vm3, %v2536_v34, %v2534_v5 }
0x3db4   :  { %v2540_v36 = vsel %vm2539_vm4, %v2538_v33, %v7530_v55 }
0x3db5   :  { %2541 = vst [vmem:[#allocation10] sm:$0xff] %v2540_v36 }
0x3db6   :  { %7068 = shalt.err (!%p7065_p8)
}
0x3db7   :  { %s7069_s6 = scalar_lea.hbm %s7830_s9, 256 }
0x3db8   :  { %p7070_p9 = scmp.ne.s32.totalorder %s7830_s9, %s7069_s6  ;;  %p7073_p10 = scmp.lt.u32.totalorder %s7069_s6, %s7830_s9 }
0x3dba   :  { %p7075_p11 = pnand %p7073_p10, %p7070_p9 }
0x3dbc   :  { %7078 = shalt.err (!%p7075_p11)
}
0x3dbd   :  { %5449 = dma.vmem_to_hbm [thread:$0]  %s5447_s19, 256, %s7830_s9, [#allocation4]  }
0x3dbe   :  { %7085 = dma.done.wait [#allocation4], 256  }
0x3dbf   :  { %7086 = vsyncadd [#allocation4], 4294967040 }
0x3dc0   :  { %5453 = vsyncpa [#allocation3], 1 }
0x3dc1   :  { %5454 = vsyncpa [#allocation6], 1 }
0x3dc2   :  { %5455 = vsyncpa [#allocation9], 1 }
0x3dc3   :  { %5456 = vsyncpa [#allocation4], 1 }

</bundles_post_ra>
